<compile_context>
chip_gen: v7x
topology: tpu7x:2x2x1
jax: 0.10.0
libtpu: 0.0.40
codegen_flags: <defaults>
</compile_context>

<pallas_src>
import functools
import math

import numpy as np

import jax
import jax.numpy as jnp
from jax.experimental import pallas as pl
from jax.experimental.pallas import tpu as pltpu


# ---------------------------------------------------------------------------
# Pallas kernel: all layers of a TGABlock in one call.
#   grid = (num_row_tiles, depth); rows are independent (the reference's
#   attention is per-token over the head axis), so the row axis is "parallel".
# ---------------------------------------------------------------------------
def _tga_block_kernel(
    x_ref, cos_ref, sin_ref, psw_ref, r_ref, b_ref, gb_ref,
    wng_ref, wattn_ref, wof_ref, wnff_ref, w12_ref, wproj_ref,
    out_ref, x_state, *, n_pad, hidden):
    eps = 1e-6
    layer = pl.program_id(1)

    # Load this row-tile's activations into the resident VMEM state at layer 0.
    @pl.when(layer == 0)
    def _init():
        x_state[...] = x_ref[...]

    x = x_state[...]                                           # (tm, D) f32

    # --- RMSNorm(grid)  (rsqrt -> EUP, no divide) ---
    ng = x * jax.lax.rsqrt(jnp.mean(x * x, axis=-1, keepdims=True) + eps) * wng_ref[0]

    # --- fused q/k/v projection, head-replicated & lane-padded to 3 x n_pad ---
    #   lanes [0:n_pad)      : q replicated per (query-head, kv-head) pair
    #   lanes [n_pad:2n_pad) : k tiled   per (query-head, kv-head) pair
    #   lanes [2n_pad:3n_pad): v tiled   per (query-head, kv-head) pair
    qkv = jnp.dot(ng, wattn_ref[0], preferred_element_type=jnp.float32)
    q = qkv[:, 0:n_pad]
    k = qkv[:, n_pad:2 * n_pad]
    v = qkv[:, 2 * n_pad:3 * n_pad]

    # --- 2D RoPE:  x*cos + signed_pair_swap(x)*sin  (swap via matmul) ---
    cos = cos_ref[...]
    sin = sin_ref[...]
    psw = psw_ref[...]
    q = q * cos + jnp.dot(q, psw, preferred_element_type=jnp.float32) * sin
    k = k * cos + jnp.dot(k, psw, preferred_element_type=jnp.float32) * sin

    # --- per-token attention over the head axis (softmax over the Hkv keys
    #     for every query head), fully vectorized on the MXU ---
    # scores[:, p] = q_hq . k_hk / sqrt(dh)   (p = hq*Hkv + hk)
    scores = jnp.dot(q * k, r_ref[...], preferred_element_type=jnp.float32)
    # one row-wide max: uniform shift per (token, head) group => exact softmax
    m = jnp.max(scores, axis=-1, keepdims=True)
    e = jnp.exp(scores - m)
    num = jnp.dot(e, b_ref[...], preferred_element_type=jnp.float32)   # weight bcast over dh
    den = jnp.dot(e, gb_ref[...], preferred_element_type=jnp.float32)  # group sums bcast over dh
    attn = (num / den) * v                                             # (tm, n_pad)

    # --- out_proj (head recombination folded into Wo) + residual ---
    x1 = x + jnp.dot(attn, wof_ref[0], preferred_element_type=jnp.float32)

    # --- RMSNorm + SwiGLU + residual ---
    nf = x1 * jax.lax.rsqrt(jnp.mean(x1 * x1, axis=-1, keepdims=True) + eps) * wnff_ref[0]
    ab = jnp.dot(nf, w12_ref[0], preferred_element_type=jnp.float32)   # (tm, 2*hidden)
    a = ab[:, :hidden]
    b = ab[:, hidden:]
    h = (a * b) / (1.0 + jnp.exp(-a))                                  # SiLU(a) * b
    x2 = x1 + jnp.dot(h, wproj_ref[0], preferred_element_type=jnp.float32)

    x_state[...] = x2

    @pl.when(layer == pl.num_programs(1) - 1)
    def _finalize():
        out_ref[...] = x2


# ---------------------------------------------------------------------------
# Host-side constants: RoPE tables, pair-swap, replication / reduction matrices
# ---------------------------------------------------------------------------
def _build_attention_constants(H, W, D, Hq, Hkv, dh):
    n_pairs = Hq * Hkv
    P = n_pairs * dh
    n_pad = ((P + 127) // 128) * 128           # lane-pad replicated width

    pair = np.arange(n_pairs)
    d = np.arange(dh)
    col = (pair[:, None] * dh + d[None, :]).reshape(-1)            # == arange(P)
    row_q = ((pair[:, None] // Hkv) * dh + d[None, :]).reshape(-1)
    row_k = ((pair[:, None] % Hkv) * dh + d[None, :]).reshape(-1)
    pair_of_col = np.repeat(pair, dh)

    # replication matrices folded into the projection weights
    e_q = np.zeros((D, n_pad), np.float32);        e_q[row_q, col] = 1.0
    e_k = np.zeros((Hkv * dh, n_pad), np.float32); e_k[row_k, col] = 1.0
    # dh-reduction (with 1/sqrt(dh) scale), weight-broadcast, group-sum-broadcast
    r_mat = np.zeros((n_pad, n_pairs), np.float32)
    r_mat[col, pair_of_col] = 1.0 / math.sqrt(dh)
    b_mat = np.zeros((n_pairs, n_pad), np.float32)
    b_mat[pair_of_col, col] = 1.0
    gb_mat = np.zeros((n_pairs, n_pad), np.float32)
    gb_mat[:, :P] = (pair[:, None] // Hkv == pair_of_col[None, :] // Hkv).astype(np.float32)
    gb_mat[:, P:] = 1.0          # keep padded denominator lanes > 0 (no 0/0)
    # head recombination (sum over kv heads) — folded into out_proj
    rv = np.zeros((n_pad, D), np.float32);         rv[col, row_q] = 1.0

    # signed pair-swap: (x @ P)[2p] = -x[2p+1], (x @ P)[2p+1] = x[2p]
    psw = np.zeros((n_pad, n_pad), np.float32)
    blk = np.array([[0.0, 1.0], [-1.0, 0.0]], np.float32)
    psw[:P, :P] = np.kron(np.eye(P // 2, dtype=np.float32), blk)

    # 2D RoPE cos/sin, replicated to the pair layout and lane-padded
    hh, ww = np.meshgrid(np.arange(H), np.arange(W), indexing="ij")
    coords = np.stack([hh, ww], -1).reshape(-1, 2).astype(np.float32)  # h-major
    quarter = dh // 4
    inv2d = 1.0 / (10000.0 ** (np.arange(quarter, dtype=np.float32) / quarter))
    th_x = coords[:, 0:1] * inv2d[None, :]
    th_y = coords[:, 1:2] * inv2d[None, :]
    cos_tok = np.concatenate([np.repeat(np.cos(th_x), 2, -1),
                              np.repeat(np.cos(th_y), 2, -1)], -1)     # (S, dh)
    sin_tok = np.concatenate([np.repeat(np.sin(th_x), 2, -1),
                              np.repeat(np.sin(th_y), 2, -1)], -1)
    S = H * W
    cos_rep = np.zeros((S, n_pad), np.float32)
    sin_rep = np.zeros((S, n_pad), np.float32)
    cos_rep[:, :P] = np.tile(cos_tok, (1, n_pairs))
    sin_rep[:, :P] = np.tile(sin_tok, (1, n_pairs))

    to_j = jnp.asarray
    return (to_j(cos_rep), to_j(sin_rep), to_j(psw), to_j(r_mat), to_j(b_mat),
            to_j(gb_mat), to_j(e_q), to_j(e_k), to_j(rv), n_pad)


def init_layer_params(key, D, Dkv, hidden):
    ks = jax.random.split(key, 6)
    std = 0.08
    return dict(
        w_norm_grid=jnp.ones((1, D), jnp.float32),            # RMSNorm init = ones
        w_norm_ff=jnp.ones((1, D), jnp.float32),
        wq=jax.random.normal(ks[0], (D, D), jnp.float32) * std,
        wk=jax.random.normal(ks[1], (D, Dkv), jnp.float32) * std,
        wv=jax.random.normal(ks[2], (D, Dkv), jnp.float32) * std,
        wo=jax.random.normal(ks[3], (D, D), jnp.float32) * std,
        w12=jax.random.normal(ks[4], (D, 2 * hidden), jnp.float32) * std,
        wproj=jax.random.normal(ks[5], (hidden, D), jnp.float32) * std,
    )
    # (norm_hist.weight and init_embed exist in the reference module but cannot
    #  affect the output under its SDPA call layout — see header note.)


def tga_block_forward(grid, hist, layer_params, *, Hq, Hkv, hidden):
    H, W, D = grid.shape
    dh = D // Hq
    S = H * W
    depth = len(layer_params)
    del hist  # dead w.r.t. the output (see header note); kept for interface parity

    (cos_rep, sin_rep, psw, r_mat, b_mat, gb_mat,
     e_q, e_k, rv, n_pad) = _build_attention_constants(H, W, D, Hq, Hkv, dh)

    # Fold head replication into the fused q|k|v projection and the head
    # recombination into out_proj; stack everything on a leading layer axis.
    w_attn = jnp.stack([jnp.concatenate(
        [p["wq"] @ e_q, p["wk"] @ e_k, p["wv"] @ e_k], axis=1) for p in layer_params])
    wo_fold = jnp.stack([rv @ p["wo"] for p in layer_params])          # (depth, n_pad, D)
    w12 = jnp.stack([p["w12"] for p in layer_params])                  # (depth, D, 2*hidden)
    wproj = jnp.stack([p["wproj"] for p in layer_params])              # (depth, hidden, D)
    wng = jnp.stack([p["w_norm_grid"] for p in layer_params])          # (depth, 1, D)
    wnff = jnp.stack([p["w_norm_ff"] for p in layer_params])

    # Row tiling: largest tile that divides S keeps blocks (8,128)-legal and lets
    # the "parallel" row axis shard over TensorCores; falls back to one tile.
    tm = S
    for cand in (256, 128, 64, 32, 16, 8):
        if S % cand == 0:
            tm = cand
            break
    num_row_tiles = S // tm

    x = grid.reshape(S, D).astype(jnp.float32)

    row = lambda i, l: (i, 0)
    const = lambda i, l: (0, 0)
    lyr = lambda i, l: (l, 0, 0)

    kernel = functools.partial(_tga_block_kernel, n_pad=n_pad, hidden=hidden)
    out = pl.pallas_call(
        kernel,
        out_shape=jax.ShapeDtypeStruct((S, D), jnp.float32),
        grid_spec=pltpu.PrefetchScalarGridSpec(
            num_scalar_prefetch=0,
            grid=(num_row_tiles, depth),
            in_specs=[
                pl.BlockSpec((tm, D), row),                    # x
                pl.BlockSpec((tm, n_pad), row),                # cos (replicated layout)
                pl.BlockSpec((tm, n_pad), row),                # sin
                pl.BlockSpec((n_pad, n_pad), const),           # pair-swap
                pl.BlockSpec((n_pad, Hq * Hkv), const),        # dh-reduction
                pl.BlockSpec((Hq * Hkv, n_pad), const),        # weight broadcast
                pl.BlockSpec((Hq * Hkv, n_pad), const),        # group-sum broadcast
                pl.BlockSpec((1, 1, D), lyr),                  # norm_grid weight
                pl.BlockSpec((1, D, 3 * n_pad), lyr),          # fused q|k|v (replicated)
                pl.BlockSpec((1, n_pad, D), lyr),              # out_proj (recomb folded)
                pl.BlockSpec((1, 1, D), lyr),                  # norm_ff weight
                pl.BlockSpec((1, D, 2 * hidden), lyr),         # SwiGLU w12
                pl.BlockSpec((1, hidden, D), lyr),             # SwiGLU proj
            ],
            out_specs=pl.BlockSpec((tm, D), row),
            scratch_shapes=[pltpu.VMEM((tm, D), jnp.float32)],
        ),
        compiler_params=pltpu.CompilerParams(
            dimension_semantics=("parallel", "arbitrary")),
    )(x, cos_rep, sin_rep, psw, r_mat, b_mat, gb_mat,
      wng, w_attn, wo_fold, wnff, w12, wproj)
    return out.reshape(H, W, D)


if __name__ == "__main__":
    depth = 2
    grid_size = 8          # small stand-in for the default 30x30 grid
    D, Hq, Hkv = 48, 6, 2  # embed_dim, query heads, kv heads -> head_dim = 8
    T = 3                  # history timesteps
    factor = 8
    hidden = factor * D
    dh = D // Hq
    Dkv = Hkv * dh

    key = jax.random.PRNGKey(0)
    kg, kh, kp = jax.random.split(key, 3)
    grid = jax.random.normal(kg, (grid_size, grid_size, D), jnp.float32)
    hist = jax.random.normal(kh, (grid_size, grid_size, T, D), jnp.float32)
    layer_params = [init_layer_params(k, D, Dkv, hidden)
                    for k in jax.random.split(kp, depth)]

    out = tga_block_forward(grid, hist, layer_params, Hq=Hq, Hkv=Hkv, hidden=hidden)
    out = jax.block_until_ready(out)
    assert out.shape == (grid_size, grid_size, D)
    assert bool(jnp.all(jnp.isfinite(out)))
    print("KERNEL_OK")
</pallas_src>

<mosaic_0001>
module attributes {stable_mosaic.version = 11 : i64} {
  func.func @_tga_block_kernel(%arg0: i32, %arg1: i32, %arg2: memref<64x48xf32, #tpu.memory_space<vmem>>, %arg3: memref<64x128xf32, #tpu.memory_space<vmem>>, %arg4: memref<64x128xf32, #tpu.memory_space<vmem>>, %arg5: memref<128x128xf32, #tpu.memory_space<vmem>>, %arg6: memref<128x12xf32, #tpu.memory_space<vmem>>, %arg7: memref<12x128xf32, #tpu.memory_space<vmem>>, %arg8: memref<12x128xf32, #tpu.memory_space<vmem>>, %arg9: memref<1x1x48xf32, #tpu.memory_space<vmem>>, %arg10: memref<1x48x384xf32, #tpu.memory_space<vmem>>, %arg11: memref<1x128x48xf32, #tpu.memory_space<vmem>>, %arg12: memref<1x1x48xf32, #tpu.memory_space<vmem>>, %arg13: memref<1x48x768xf32, #tpu.memory_space<vmem>>, %arg14: memref<1x384x48xf32, #tpu.memory_space<vmem>>, %arg15: memref<64x48xf32, #tpu.memory_space<vmem>>, %arg16: memref<64x48xf32, #tpu.memory_space<vmem>>) attributes {dimension_semantics = [#tpu.dimension_semantics<parallel>, #tpu.dimension_semantics<arbitrary>], iteration_bounds = array<i64: 1, 2>, scalar_prefetch = 0 : i64, scratch_operands = 1 : i64, tpu.core_type = #tpu.core_type<tc>, window_params = [{transform_indices = @transform_0, window_bounds = array<i64: 64, 48>}, {transform_indices = @transform_1, window_bounds = array<i64: 64, 128>}, {transform_indices = @transform_2, window_bounds = array<i64: 64, 128>}, {pipeline_mode = #tpu.pipeline_mode<synchronous>, transform_indices = @transform_3, window_bounds = array<i64: 128, 128>}, {pipeline_mode = #tpu.pipeline_mode<synchronous>, transform_indices = @transform_4, window_bounds = array<i64: 128, 12>}, {pipeline_mode = #tpu.pipeline_mode<synchronous>, transform_indices = @transform_5, window_bounds = array<i64: 12, 128>}, {pipeline_mode = #tpu.pipeline_mode<synchronous>, transform_indices = @transform_6, window_bounds = array<i64: 12, 128>}, {transform_indices = @transform_7, window_bounds = array<i64: 1, 1, 48>}, {transform_indices = @transform_8, window_bounds = array<i64: 1, 48, 384>}, {transform_indices = @transform_9, window_bounds = array<i64: 1, 128, 48>}, {transform_indices = @transform_10, window_bounds = array<i64: 1, 1, 48>}, {transform_indices = @transform_11, window_bounds = array<i64: 1, 48, 768>}, {transform_indices = @transform_12, window_bounds = array<i64: 1, 384, 48>}, {transform_indices = @transform_13, window_bounds = array<i64: 64, 48>}]} {
    %c0_i32 = arith.constant 0 : i32
    %0 = arith.cmpi eq, %arg1, %c0_i32 : i32
    %1 = arith.extui %0 : i1 to i32
    %c0_i32_0 = arith.constant 0 : i32
    %2 = arith.cmpi ne, %1, %c0_i32_0 : i32
    scf.if %2 {
      %c0_52 = arith.constant 0 : index
      %c0_53 = arith.constant 0 : index
      %87 = vector.load %arg2[%c0_52, %c0_53] : memref<64x48xf32, #tpu.memory_space<vmem>>, vector<64x48xf32>
      %c0_54 = arith.constant 0 : index
      %c0_55 = arith.constant 0 : index
      %88 = vector.load %arg16[%c0_54, %c0_55] : memref<64x48xf32, #tpu.memory_space<vmem>>, vector<64x48xf32>
      tpu.vector_store %arg16[%c0_54, %c0_55], %87 {strides = array<i32>} : memref<64x48xf32, #tpu.memory_space<vmem>>, vector<64x48xf32>,
    } else {
    }
    %c0 = arith.constant 0 : index
    %c0_1 = arith.constant 0 : index
    %3 = vector.load %arg16[%c0, %c0_1] : memref<64x48xf32, #tpu.memory_space<vmem>>, vector<64x48xf32>
    %4 = arith.mulf %3, %3 : vector<64x48xf32>
    %cst = arith.constant dense<0.000000e+00> : vector<64xf32>
    %5 = vector.multi_reduction <add>, %4, %cst [1] : vector<64x48xf32> to vector<64xf32>
    %6 = vector.shape_cast %5 : vector<64xf32> to vector<64x1xf32>
    %cst_2 = arith.constant 4.800000e+01 : f32
    %7 = vector.broadcast %cst_2 : f32 to vector<64x1xf32>
    %8 = arith.divf %6, %7 : vector<64x1xf32>
    %cst_3 = arith.constant 9.99999997E-7 : f32
    %9 = vector.broadcast %cst_3 : f32 to vector<64x1xf32>
    %10 = arith.addf %8, %9 : vector<64x1xf32>
    %11 = math.rsqrt %10 : vector<64x1xf32>
    %12 = vector.broadcast %11 : vector<64x1xf32> to vector<64x48xf32>
    %13 = arith.mulf %3, %12 : vector<64x48xf32>
    %c0_4 = arith.constant 0 : index
    %c0_5 = arith.constant 0 : index
    %c0_6 = arith.constant 0 : index
    %14 = vector.load %arg9[%c0_4, %c0_5, %c0_6] : memref<1x1x48xf32, #tpu.memory_space<vmem>>, vector<1x1x48xf32>
    %15 = vector.shape_cast %14 : vector<1x1x48xf32> to vector<1x48xf32>
    %16 = vector.broadcast %15 : vector<1x48xf32> to vector<64x48xf32>
    %17 = arith.mulf %13, %16 : vector<64x48xf32>
    %c0_7 = arith.constant 0 : index
    %c0_8 = arith.constant 0 : index
    %c0_9 = arith.constant 0 : index
    %18 = vector.load %arg10[%c0_7, %c0_8, %c0_9] : memref<1x48x384xf32, #tpu.memory_space<vmem>>, vector<1x48x384xf32>
    %19 = vector.shape_cast %18 : vector<1x48x384xf32> to vector<48x384xf32>
    %cst_10 = arith.constant dense<0.000000e+00> : vector<64x384xf32>
    %20 = tpu.matmul %17, %19, %cst_10 {dimension_numbers = #tpu.dot_dimension_numbers<[1], [0], [0], [1], [0, 0, 1, 1], [], []>} : vector<64x48xf32>, vector<48x384xf32>, vector<64x384xf32> -> vector<64x384xf32>
    %21 = vector.extract_strided_slice %20 {offsets = [0, 0], sizes = [64, 128], strides = [1, 1]} : vector<64x384xf32> to vector<64x128xf32>
    %22 = vector.extract_strided_slice %20 {offsets = [0, 128], sizes = [64, 128], strides = [1, 1]} : vector<64x384xf32> to vector<64x128xf32>
    %23 = vector.extract_strided_slice %20 {offsets = [0, 256], sizes = [64, 128], strides = [1, 1]} : vector<64x384xf32> to vector<64x128xf32>
    %c0_11 = arith.constant 0 : index
    %c0_12 = arith.constant 0 : index
    %24 = vector.load %arg3[%c0_11, %c0_12] : memref<64x128xf32, #tpu.memory_space<vmem>>, vector<64x128xf32>
    %c0_13 = arith.constant 0 : index
    %c0_14 = arith.constant 0 : index
    %25 = vector.load %arg4[%c0_13, %c0_14] : memref<64x128xf32, #tpu.memory_space<vmem>>, vector<64x128xf32>
    %c0_15 = arith.constant 0 : index
    %c0_16 = arith.constant 0 : index
    %26 = vector.load %arg5[%c0_15, %c0_16] : memref<128x128xf32, #tpu.memory_space<vmem>>, vector<128x128xf32>
    %27 = arith.mulf %21, %24 : vector<64x128xf32>
    %cst_17 = arith.constant dense<0.000000e+00> : vector<64x128xf32>
    %28 = tpu.matmul %21, %26, %cst_17 {dimension_numbers = #tpu.dot_dimension_numbers<[1], [0], [0], [1], [0, 0, 1, 1], [], []>} : vector<64x128xf32>, vector<128x128xf32>, vector<64x128xf32> -> vector<64x128xf32>
    %29 = arith.mulf %28, %25 : vector<64x128xf32>
    %30 = arith.addf %27, %29 : vector<64x128xf32>
    %31 = arith.mulf %22, %24 : vector<64x128xf32>
    %cst_18 = arith.constant dense<0.000000e+00> : vector<64x128xf32>
    %32 = tpu.matmul %22, %26, %cst_18 {dimension_numbers = #tpu.dot_dimension_numbers<[1], [0], [0], [1], [0, 0, 1, 1], [], []>} : vector<64x128xf32>, vector<128x128xf32>, vector<64x128xf32> -> vector<64x128xf32>
    %33 = arith.mulf %32, %25 : vector<64x128xf32>
    %34 = arith.addf %31, %33 : vector<64x128xf32>
    %35 = arith.mulf %30, %34 : vector<64x128xf32>
    %c0_19 = arith.constant 0 : index
    %c0_20 = arith.constant 0 : index
    %36 = vector.load %arg6[%c0_19, %c0_20] : memref<128x12xf32, #tpu.memory_space<vmem>>, vector<128x12xf32>
    %cst_21 = arith.constant dense<0.000000e+00> : vector<64x12xf32>
    %37 = tpu.matmul %35, %36, %cst_21 {dimension_numbers = #tpu.dot_dimension_numbers<[1], [0], [0], [1], [0, 0, 1, 1], [], []>} : vector<64x128xf32>, vector<128x12xf32>, vector<64x12xf32> -> vector<64x12xf32>
    %cst_22 = arith.constant dense<0xFF800000> : vector<64xf32>
    %38 = vector.multi_reduction <maximumf>, %37, %cst_22 [1] : vector<64x12xf32> to vector<64xf32>
    %39 = vector.shape_cast %38 : vector<64xf32> to vector<64x1xf32>
    %40 = vector.broadcast %39 : vector<64x1xf32> to vector<64x12xf32>
    %41 = arith.subf %37, %40 : vector<64x12xf32>
    %42 = math.exp %41 : vector<64x12xf32>
    %c0_23 = arith.constant 0 : index
    %c0_24 = arith.constant 0 : index
    %43 = vector.load %arg7[%c0_23, %c0_24] : memref<12x128xf32, #tpu.memory_space<vmem>>, vector<12x128xf32>
    %cst_25 = arith.constant dense<0.000000e+00> : vector<64x128xf32>
    %44 = tpu.matmul %42, %43, %cst_25 {dimension_numbers = #tpu.dot_dimension_numbers<[1], [0], [0], [1], [0, 0, 1, 1], [], []>} : vector<64x12xf32>, vector<12x128xf32>, vector<64x128xf32> -> vector<64x128xf32>
    %c0_26 = arith.constant 0 : index
    %c0_27 = arith.constant 0 : index
    %45 = vector.load %arg8[%c0_26, %c0_27] : memref<12x128xf32, #tpu.memory_space<vmem>>, vector<12x128xf32>
    %cst_28 = arith.constant dense<0.000000e+00> : vector<64x128xf32>
    %46 = tpu.matmul %42, %45, %cst_28 {dimension_numbers = #tpu.dot_dimension_numbers<[1], [0], [0], [1], [0, 0, 1, 1], [], []>} : vector<64x12xf32>, vector<12x128xf32>, vector<64x128xf32> -> vector<64x128xf32>
    %47 = arith.divf %44, %46 : vector<64x128xf32>
    %48 = arith.mulf %47, %23 : vector<64x128xf32>
    %c0_29 = arith.constant 0 : index
    %c0_30 = arith.constant 0 : index
    %c0_31 = arith.constant 0 : index
    %49 = vector.load %arg11[%c0_29, %c0_30, %c0_31] : memref<1x128x48xf32, #tpu.memory_space<vmem>>, vector<1x128x48xf32>
    %50 = vector.shape_cast %49 : vector<1x128x48xf32> to vector<128x48xf32>
    %cst_32 = arith.constant dense<0.000000e+00> : vector<64x48xf32>
    %51 = tpu.matmul %48, %50, %cst_32 {dimension_numbers = #tpu.dot_dimension_numbers<[1], [0], [0], [1], [0, 0, 1, 1], [], []>} : vector<64x128xf32>, vector<128x48xf32>, vector<64x48xf32> -> vector<64x48xf32>
    %52 = arith.addf %3, %51 : vector<64x48xf32>
    %53 = arith.mulf %52, %52 : vector<64x48xf32>
    %cst_33 = arith.constant dense<0.000000e+00> : vector<64xf32>
    %54 = vector.multi_reduction <add>, %53, %cst_33 [1] : vector<64x48xf32> to vector<64xf32>
    %55 = vector.shape_cast %54 : vector<64xf32> to vector<64x1xf32>
    %cst_34 = arith.constant 4.800000e+01 : f32
    %56 = vector.broadcast %cst_34 : f32 to vector<64x1xf32>
    %57 = arith.divf %55, %56 : vector<64x1xf32>
    %cst_35 = arith.constant 9.99999997E-7 : f32
    %58 = vector.broadcast %cst_35 : f32 to vector<64x1xf32>
    %59 = arith.addf %57, %58 : vector<64x1xf32>
    %60 = math.rsqrt %59 : vector<64x1xf32>
    %61 = vector.broadcast %60 : vector<64x1xf32> to vector<64x48xf32>
    %62 = arith.mulf %52, %61 : vector<64x48xf32>
    %c0_36 = arith.constant 0 : index
    %c0_37 = arith.constant 0 : index
    %c0_38 = arith.constant 0 : index
    %63 = vector.load %arg12[%c0_36, %c0_37, %c0_38] : memref<1x1x48xf32, #tpu.memory_space<vmem>>, vector<1x1x48xf32>
    %64 = vector.shape_cast %63 : vector<1x1x48xf32> to vector<1x48xf32>
    %65 = vector.broadcast %64 : vector<1x48xf32> to vector<64x48xf32>
    %66 = arith.mulf %62, %65 : vector<64x48xf32>
    %c0_39 = arith.constant 0 : index
    %c0_40 = arith.constant 0 : index
    %c0_41 = arith.constant 0 : index
    %67 = vector.load %arg13[%c0_39, %c0_40, %c0_41] : memref<1x48x768xf32, #tpu.memory_space<vmem>>, vector<1x48x768xf32>
    %68 = vector.shape_cast %67 : vector<1x48x768xf32> to vector<48x768xf32>
    %cst_42 = arith.constant dense<0.000000e+00> : vector<64x768xf32>
    %69 = tpu.matmul %66, %68, %cst_42 {dimension_numbers = #tpu.dot_dimension_numbers<[1], [0], [0], [1], [0, 0, 1, 1], [], []>} : vector<64x48xf32>, vector<48x768xf32>, vector<64x768xf32> -> vector<64x768xf32>
    %70 = vector.extract_strided_slice %69 {offsets = [0, 0], sizes = [64, 384], strides = [1, 1]} : vector<64x768xf32> to vector<64x384xf32>
    %71 = vector.extract_strided_slice %69 {offsets = [0, 384], sizes = [64, 384], strides = [1, 1]} : vector<64x768xf32> to vector<64x384xf32>
    %72 = arith.mulf %70, %71 : vector<64x384xf32>
    %cst_43 = arith.constant 0.000000e+00 : f32
    %73 = vector.broadcast %cst_43 : f32 to vector<64x384xf32>
    %74 = arith.subf %73, %70 : vector<64x384xf32>
    %75 = math.exp %74 : vector<64x384xf32>
    %cst_44 = arith.constant 1.000000e+00 : f32
    %76 = vector.broadcast %cst_44 : f32 to vector<64x384xf32>
    %77 = arith.addf %76, %75 : vector<64x384xf32>
    %78 = arith.divf %72, %77 : vector<64x384xf32>
    %c0_45 = arith.constant 0 : index
    %c0_46 = arith.constant 0 : index
    %c0_47 = arith.constant 0 : index
    %79 = vector.load %arg14[%c0_45, %c0_46, %c0_47] : memref<1x384x48xf32, #tpu.memory_space<vmem>>, vector<1x384x48xf32>
    %80 = vector.shape_cast %79 : vector<1x384x48xf32> to vector<384x48xf32>
    %cst_48 = arith.constant dense<0.000000e+00> : vector<64x48xf32>
    %81 = tpu.matmul %78, %80, %cst_48 {dimension_numbers = #tpu.dot_dimension_numbers<[1], [0], [0], [1], [0, 0, 1, 1], [], []>} : vector<64x384xf32>, vector<384x48xf32>, vector<64x48xf32> -> vector<64x48xf32>
    %82 = arith.addf %52, %81 : vector<64x48xf32>
    %c0_49 = arith.constant 0 : index
    %c0_50 = arith.constant 0 : index
    %83 = vector.load %arg16[%c0_49, %c0_50] : memref<64x48xf32, #tpu.memory_space<vmem>>, vector<64x48xf32>
    tpu.vector_store %arg16[%c0_49, %c0_50], %82 {strides = array<i32>} : memref<64x48xf32, #tpu.memory_space<vmem>>, vector<64x48xf32>,
    %c1_i32 = arith.constant 1 : i32
    %84 = arith.cmpi eq, %arg1, %c1_i32 : i32
    %85 = arith.extui %84 : i1 to i32
    %c0_i32_51 = arith.constant 0 : i32
    %86 = arith.cmpi ne, %85, %c0_i32_51 : i32
    scf.if %86 {
      %c0_52 = arith.constant 0 : index
      %c0_53 = arith.constant 0 : index
      %87 = vector.load %arg15[%c0_52, %c0_53] : memref<64x48xf32, #tpu.memory_space<vmem>>, vector<64x48xf32>
      tpu.vector_store %arg15[%c0_52, %c0_53], %82 {strides = array<i32>} : memref<64x48xf32, #tpu.memory_space<vmem>>, vector<64x48xf32>,
    } else {
    }
    return
  }
  func.func @transform_0(%arg0: i32, %arg1: i32) -> (i32, i32) {
    %c0_i32 = arith.constant 0 : i32
    %c0_i32_0 = arith.constant 0 : i32
    return %arg0, %c0_i32 : i32, i32
  }
  func.func @transform_1(%arg0: i32, %arg1: i32) -> (i32, i32) {
    %c0_i32 = arith.constant 0 : i32
    %c0_i32_0 = arith.constant 0 : i32
    return %arg0, %c0_i32 : i32, i32
  }
  func.func @transform_2(%arg0: i32, %arg1: i32) -> (i32, i32) {
    %c0_i32 = arith.constant 0 : i32
    %c0_i32_0 = arith.constant 0 : i32
    return %arg0, %c0_i32 : i32, i32
  }
  func.func @transform_3(%arg0: i32, %arg1: i32) -> (i32, i32) {
    %c0_i32 = arith.constant 0 : i32
    %c0_i32_0 = arith.constant 0 : i32
    %c0_i32_1 = arith.constant 0 : i32
    return %c0_i32, %c0_i32_0 : i32, i32
  }
  func.func @transform_4(%arg0: i32, %arg1: i32) -> (i32, i32) {
    %c0_i32 = arith.constant 0 : i32
    %c0_i32_0 = arith.constant 0 : i32
    %c0_i32_1 = arith.constant 0 : i32
    return %c0_i32, %c0_i32_0 : i32, i32
  }
  func.func @transform_5(%arg0: i32, %arg1: i32) -> (i32, i32) {
    %c0_i32 = arith.constant 0 : i32
    %c0_i32_0 = arith.constant 0 : i32
    %c0_i32_1 = arith.constant 0 : i32
    return %c0_i32, %c0_i32_0 : i32, i32
  }
  func.func @transform_6(%arg0: i32, %arg1: i32) -> (i32, i32) {
    %c0_i32 = arith.constant 0 : i32
    %c0_i32_0 = arith.constant 0 : i32
    %c0_i32_1 = arith.constant 0 : i32
    return %c0_i32, %c0_i32_0 : i32, i32
  }
  func.func @transform_7(%arg0: i32, %arg1: i32) -> (i32, i32, i32) {
    %c0_i32 = arith.constant 0 : i32
    %c0_i32_0 = arith.constant 0 : i32
    %c0_i32_1 = arith.constant 0 : i32
    return %arg1, %c0_i32, %c0_i32_0 : i32, i32, i32
  }
  func.func @transform_8(%arg0: i32, %arg1: i32) -> (i32, i32, i32) {
    %c0_i32 = arith.constant 0 : i32
    %c0_i32_0 = arith.constant 0 : i32
    %c0_i32_1 = arith.constant 0 : i32
    return %arg1, %c0_i32, %c0_i32_0 : i32, i32, i32
  }
  func.func @transform_9(%arg0: i32, %arg1: i32) -> (i32, i32, i32) {
    %c0_i32 = arith.constant 0 : i32
    %c0_i32_0 = arith.constant 0 : i32
    %c0_i32_1 = arith.constant 0 : i32
    return %arg1, %c0_i32, %c0_i32_0 : i32, i32, i32
  }
  func.func @transform_10(%arg0: i32, %arg1: i32) -> (i32, i32, i32) {
    %c0_i32 = arith.constant 0 : i32
    %c0_i32_0 = arith.constant 0 : i32
    %c0_i32_1 = arith.constant 0 : i32
    return %arg1, %c0_i32, %c0_i32_0 : i32, i32, i32
  }
  func.func @transform_11(%arg0: i32, %arg1: i32) -> (i32, i32, i32) {
    %c0_i32 = arith.constant 0 : i32
    %c0_i32_0 = arith.constant 0 : i32
    %c0_i32_1 = arith.constant 0 : i32
    return %arg1, %c0_i32, %c0_i32_0 : i32, i32, i32
  }
  func.func @transform_12(%arg0: i32, %arg1: i32) -> (i32, i32, i32) {
    %c0_i32 = arith.constant 0 : i32
    %c0_i32_0 = arith.constant 0 : i32
    %c0_i32_1 = arith.constant 0 : i32
    return %arg1, %c0_i32, %c0_i32_0 : i32, i32, i32
  }
  func.func @transform_13(%arg0: i32, %arg1: i32) -> (i32, i32) {
    %c0_i32 = arith.constant 0 : i32
    %c0_i32_0 = arith.constant 0 : i32
    return %arg0, %c0_i32 : i32, i32
  }
}

</mosaic_0001>

<bundles_post_ra>
// kernel: tpu_custom_call.1
= control target key start
LH: loop header
LB: loop body
LE: loop exit
PB: predicated region body
PF: predicated region fallthrough
CT: control target
= control target key end

     0   :  { %s4059_s25 = smov 0   ;;  %s4061_s26 = smov 0   ;;  %s4893_s0 = inlined_call_operand.vmem [shape: f32[64,48], index: 0, kind: input, shape index: {}]   ;;  %s4894_s1 = inlined_call_operand.vmem [shape: f32[64,128], index: 1, kind: input, shape index: {}]   ;;  %s4895_s2 = inlined_call_operand.vmem [shape: f32[64,128], index: 2, kind: input, shape index: {}]   ;;  %s4896_s3 = inlined_call_operand.vmem [shape: f32[128,128], index: 3, kind: input, shape index: {}]   ;;  %s4897_s4 = inlined_call_operand.vmem [shape: f32[128,12], index: 4, kind: input, shape index: {}]   ;;  %s4898_s5 = inlined_call_operand.vmem [shape: f32[12,128], index: 5, kind: input, shape index: {}]   ;;  %s4899_s6 = inlined_call_operand.vmem [shape: f32[12,128], index: 6, kind: input, shape index: {}]   ;;  %s4900_s7 = inlined_call_operand.vmem [shape: f32[2,1,48], index: 7, kind: input, shape index: {}]   ;;  %s4901_s8 = inlined_call_operand.vmem [shape: f32[2,48,384], index: 8, kind: input, shape index: {}]   ;;  %s4902_s9 = inlined_call_operand.vmem [shape: f32[2,128,48], index: 9, kind: input, shape index: {}]   ;;  %s4903_s10 = inlined_call_operand.vmem [shape: f32[2,1,48], index: 10, kind: input, shape index: {}]   ;;  %s4904_s11 = inlined_call_operand.vmem [shape: f32[2,48,768], index: 11, kind: input, shape index: {}]   ;;  %s4905_s12 = inlined_call_operand.vmem [shape: f32[2,384,48], index: 12, kind: input, shape index: {}]   ;;  %s4906_s13 = inlined_call_operand.vmem [shape: f32[64,48], index: 13, kind: output, shape index: {}]  }
   0x1   :  { %4911 = sst [smem:[#allocation6_spill]] %s4899_s6  ;;  %s4063_s27 = smov 0  }
   0x2   :  { %4912 = sst [smem:[#allocation7_spill]] %s4906_s13 }
   0x3 LB: > { %4913 = sst [smem:[#allocation3_spill]] %s3981_s26  ;;  %s32_s28 = sadd.s32 1, %s3981_s26  ;;  %s3985_s27 = sphi %s4063_s27, %s23_s27   ;;  %s3981_s26 = sphi %s4061_s26, %s4923_s26   ;;  %s3977_s25 = sphi %s4059_s25, %s4922_s25  }
   0x4   : > { %4914 = sst [smem:[#allocation4_spill]] %s3985_s27  ;;  %p2943_p0 = scmp.ge.s32.totalorder %s3985_s27, 1 }
   0x5   : > { %p33_p1 = scmp.ge.s32.totalorder %s32_s28, 2  ;;  %p478_p2 = scmp.lt.s32.totalorder %s3985_s27, 3 }
   0x7   : > { %s4925_s28 = smov (%p33_p1, %s32_s28), 0  ;;  %p479_p3 = pnand %p2943_p0, %p478_p2 }
   0x8   : > { %4915 = sst [smem:[#allocation5_spill]] %s4925_s28  ;;  %p576_p4 = scmp.lt.s32.totalorder (!%p479_p3), %s3977_s25, 1 }
   0x9   : > { %482 = sbr.rel (%p479_p3) target bundleno = 2141 (0x85d), region = 72  ;;  %p2949_p5 = scmp.ne.s32.totalorder (!%p479_p3), %s3977_s25, 0 }
  0x10   : > { %s4081_s29 = scalar_select %p576_p4, %s3977_s25, 1 }
  0x11   : > { %611 = sbr.rel (%p2949_p5) target bundleno = 24 (0x18), region = 76  ;;  %v612_v0 = vld [vmem:[%s4893_s0] sm:$0xff] (!%p2949_p5)  ;;  %vm620_vm0 = vcmask (!%p2949_p5), 392192   ;;  %v613_v1 = vld [vmem:[%s4893_s0 + $0x8] sm:$0xff] (!%p2949_p5)  ;;  %v614_v2 = vld [vmem:[%s4893_s0 + $0x10] sm:$0xff] (!%p2949_p5) }
  0x12   : > { %s3766_s16 = smul.u32 144, %s4081_s29  ;;  %s3015_s17 = sshll.u32 %s4081_s29, 7  ;;  %621 = vst.msk [vmem:[#allocation2] sm:$0xff] (!%p2949_p5), %vm620_vm0, %v612_v0  ;;  %622 = vst.msk [vmem:[#allocation2 + $0x8] sm:$0xff] (!%p2949_p5), %vm620_vm0, %v613_v1  ;;  %v615_v3 = vld [vmem:[%s4893_s0 + $0x18] sm:$0xff] (!%p2949_p5)  ;;  %v616_v4 = vld [vmem:[%s4893_s0 + $0x20] sm:$0xff] (!%p2949_p5) }
  0x13   : > { %s591_s20 = scalar_lea.vmem %s4903_s10, %s4081_s29  ;;  %s4101_s30 = scalar_lea.vmem %s4902_s9, %s3015_s17  ;;  %623 = vst.msk [vmem:[#allocation2 + $0x10] sm:$0xff] (!%p2949_p5), %vm620_vm0, %v614_v2  ;;  %v617_v5 = vld [vmem:[%s4893_s0 + $0x28] sm:$0xff] (!%p2949_p5)  ;;  %624 = vst.msk [vmem:[#allocation2 + $0x18] sm:$0xff] (!%p2949_p5), %vm620_vm0, %v615_v3  ;;  %v618_v6 = vld [vmem:[%s4893_s0 + $0x30] sm:$0xff] (!%p2949_p5) }
  0x14   : > { %s4096_s23 = scalar_lea.vmem %s4901_s8, %s3766_s16  ;;  %s3767_s14 = smul.u32 288, %s4081_s29  ;;  %625 = vst.msk [vmem:[#allocation2 + $0x20] sm:$0xff] (!%p2949_p5), %vm620_vm0, %v616_v4  ;;  %626 = vst.msk [vmem:[#allocation2 + $0x28] sm:$0xff] (!%p2949_p5), %vm620_vm0, %v617_v5  ;;  %v619_v7 = vld [vmem:[%s4893_s0 + $0x38] sm:$0xff] (!%p2949_p5) }
  0x15   : > { %s3768_s26 = smul.u32 384, %s4081_s29  ;;  %627 = vst.msk [vmem:[#allocation2 + $0x30] sm:$0xff] (!%p2949_p5), %vm620_vm0, %v618_v6  ;;  %628 = vst.msk [vmem:[#allocation2 + $0x38] sm:$0xff] (!%p2949_p5), %vm620_vm0, %v619_v7 }
  0x16   : > { %s4108_s13 = scalar_lea.vmem %s4904_s11, %s3767_s14 }
  0x17   : > { %s4113_s19 = scalar_lea.vmem %s4905_s12, %s3768_s26 }
  0x18 PF: > { %vm645_vm1 = vcmask 392192   ;;  %v719_v32 = vld [vmem:[%s4096_s23 + $0x8] sm:$0xff]  ;;  %v722_v33 = vld [vmem:[%s4096_s23 + $0x20] sm:$0xff]  ;;  %v721_v36 = vld [vmem:[%s4096_s23 + $0x18] sm:$0xff]  ;;  %v3987_v56 = vmov 0.0   ;;  %s4916_s24 = scalar_lea.vmem %s4900_s7, %s4081_s29  ;;  %vm1397_vm2 = vcmask 97280  }
  0x19   : > { %v4140_v8 = vld [vmem:[#allocation2] sm:$0xff]  ;;  %v4142_v9 = vld [vmem:[#allocation2 + $0x8] sm:$0xff]  ;;  %v3502_v34 = vpack.c.bf16 %v722_v33, %v719_v32  ;;  %v725_v38 = vld [vmem:[%s4096_s23 + $0x38] sm:$0xff]  ;;  %824 = vmatprep.mubr.f32.mxu0 %v3987_v56  ;;  %vm1472_vm3 = vcmask 1043456   ;;  %vm3988_vm4 = vmmov 1   ;;  %s4919_s15 = sld [smem:[#allocation6_spill]] }
  0x1a   : > { %v4144_v10 = vld [vmem:[#allocation2 + $0x10] sm:$0xff]  ;;  %v637_v11 = vmul.f32 %v4140_v8, %v4140_v8  ;;  %v638_v12 = vmul.f32 %v4142_v9, %v4142_v9  ;;  %v4152_v14 = vld [vmem:[#allocation2 + $0x18] sm:$0xff]  ;;  %v718_v35 = vld [vmem:[%s4096_s23] sm:$0xff]  ;;  %p3010_p6 = scmp.ne.s32.totalorder %s3977_s25, 1 }
  0x1b   : > { %v639_v13 = vmul.f32 %v4144_v10, %v4144_v10  ;;  %v640_v15 = vmul.f32 %v4152_v14, %v4152_v14  ;;  %v4156_v16 = vld [vmem:[#allocation2 + $0x20] sm:$0xff]  ;;  %v4158_v17 = vld [vmem:[#allocation2 + $0x28] sm:$0xff]  ;;  %v3504_v37 = vpack.c.bf16 %v721_v36, %v718_v35  ;;  %3503 = vmatprep.subr.bf16.mxu0 %v3502_v34  ;;  %v728_v39 = vld [vmem:[%s4096_s23 + $0x50] sm:$0xff] }
  0x1c   : > { %v646_v18 = vsel %vm645_vm1, %v637_v11, 0.0  ;;  %v649_v20 = vsel %vm645_vm1, %v638_v12, 0.0  ;;  %v641_v22 = vmul.f32 %v4156_v16, %v4156_v16  ;;  %v642_v23 = vmul.f32 %v4158_v17, %v4158_v17  ;;  %v4168_v24 = vld [vmem:[#allocation2 + $0x30] sm:$0xff]  ;;  %v4170_v25 = vld [vmem:[#allocation2 + $0x38] sm:$0xff]  ;;  %v723_v42 = vld [vmem:[%s4096_s23 + $0x28] sm:$0xff] }
  0x1d   : > { %v652_v19 = vsel %vm645_vm1, %v639_v13, 0.0  ;;  %647 = vadd.xlane.f32.xlu0 %v646_v18  ;;  %v655_v21 = vsel %vm645_vm1, %v640_v15, 0.0  ;;  %v643_v28 = vmul.f32 %v4168_v24, %v4168_v24  ;;  %v644_v29 = vmul.f32 %v4170_v25, %v4170_v25  ;;  %3505 = vmatpush1.bf16.msra.mxu0 %v3504_v37  ;;  %v720_v40 = vld [vmem:[%s4096_s23 + $0x10] sm:$0xff]  ;;  %v727_v44 = vld [vmem:[%s4096_s23 + $0x48] sm:$0xff]  ;;  %v734_v48 = vld [vmem:[%s4096_s23 + $0x80] sm:$0xff] }
  0x1e   : > { %653 = vadd.xlane.f32.xlu1 %v652_v19  ;;  %v658_v26 = vsel %vm645_vm1, %v641_v22, 0.0  ;;  %v661_v27 = vsel %vm645_vm1, %v642_v23, 0.0  ;;  %v3506_v41 = vpack.c.bf16 %v728_v39, %v725_v38  ;;  %v724_v43 = vld [vmem:[%s4096_s23 + $0x30] sm:$0xff]  ;;  %v3514_v45 = vpack.c.bf16 %v723_v42, %v720_v40  ;;  %v731_v47 = vld [vmem:[%s4096_s23 + $0x68] sm:$0xff]  ;;  %v726_v49 = vld [vmem:[%s4096_s23 + $0x40] sm:$0xff] }
  0x1f   : > { %v664_v30 = vsel %vm645_vm1, %v643_v28, 0.0  ;;  %v667_v31 = vsel %vm645_vm1, %v644_v29, 0.0  ;;  %v3508_v46 = vpack.c.bf16 %v727_v44, %v724_v43  ;;  %v3510_v50 = vpack.c.bf16 %v734_v48, %v731_v47  ;;  %v729_v51 = vld [vmem:[%s4096_s23 + $0x58] sm:$0xff]  ;;  %v730_v53 = vld [vmem:[%s4096_s23 + $0x60] sm:$0xff]  ;;  %v732_v57 = vld [vmem:[%s4096_s23 + $0x70] sm:$0xff] }
  0x20   : > { %3507 = vmatprep.subr.bf16.mxu0 %v3506_v41  ;;  %3515 = vmatprep.subr.bf16.mxu1 %v3514_v45  ;;  %v3518_v52 = vpack.c.bf16 %v729_v51, %v726_v49  ;;  %v733_v54 = vld [vmem:[%s4096_s23 + $0x78] sm:$0xff]  ;;  %v735_v58 = vld [vmem:[%s4096_s23 + $0x88] sm:$0xff]  ;;  %v994_v60 = vld [vmem:[%s4896_s3] sm:$0xff] }
  0x21   : > { %650 = vadd.xlane.f32.xlu0 %v649_v20  ;;  %3509 = vmatpush1.bf16.msra.mxu0 %v3508_v46  ;;  %v3512_v55 = vpack.c.bf16 %v733_v54, %v730_v53  ;;  %v3522_v59 = vpack.c.bf16 %v735_v58, %v732_v57  ;;  %v995_v61 = vld [vmem:[%s4896_s3 + $0x8] sm:$0xff]  ;;  %v4214_v29 = vld [vmem:[%s4916_s24] ss:$0 sm:$0xff]  ;;  %v996_v33 = vld [vmem:[%s4896_s3 + $0x10] sm:$0xff] }
  0x22   : > { %656 = vadd.xlane.f32.xlu1 %v655_v21  ;;  %3517 = vmatpush3.bf16.msra.mxu1 %v3514_v45  ;;  %v4205_v62 = vpack.c.bf16 %v995_v61, %v994_v60  ;;  %v997_v34 = vld [vmem:[%s4896_s3 + $0x18] sm:$0xff]  ;;  %v998_v43 = vld [vmem:[%s4896_s3 + $0x20] sm:$0xff]  ;;  %v1003_v58 = vld [vmem:[%s4896_s3 + $0x48] sm:$0xff] }
  0x23   : > { %3511 = vmatprep.subr.bf16.mxu0 %v3510_v50  ;;  %3519 = vmatprep.subr.bf16.mxu1 %v3518_v52  ;;  %v3530_v39 = vpack.c.bf16 %v997_v34, %v996_v33  ;;  %v1001_v50 = vld [vmem:[%s4896_s3 + $0x38] sm:$0xff]  ;;  %vm4489_vm5 = vmpackc.low %vm1472_vm3, %vm3988_vm4 }
  0x25   : > { %659 = vadd.xlane.f32.xlu0 %v658_v26  ;;  %3513 = vmatpush1.bf16.msra.mxu0 %v3512_v55 }
  0x26   : > { %662 = vadd.xlane.f32.xlu1 %v661_v27  ;;  %3521 = vmatpush3.bf16.msra.mxu1 %v3518_v52 }
  0x27   : > { %3523 = vmatprep.subr.bf16.mxu1 %v3522_v59  ;;  %3527 = vmatprep.subr.bf16.mxu0 %v4205_v62 }
  0x29   : > { %665 = vadd.xlane.f32.xlu0 %v664_v30 }
  0x2a   : > { %668 = vadd.xlane.f32.xlu1 %v667_v31  ;;  %3525 = vmatpush3.bf16.msra.mxu1 %v3522_v59 }
  0x2b   : > { %3559 = vmatprep.subr.bf16.mxu1 %v4205_v62 }
  0xaa   : > { %v648_v63 = vpop.xlane.xlu0 %647 }
  0xab   : > { %v654_v0 = vpop.xlane.xlu1 %653  ;;  %v671_v1 = vmul.f32 0.020833334, %v648_v63 }
  0xac   : > { %v673_v2 = vmul.f32 0.020833334, %v654_v0  ;;  %v1006_v0 = vld [vmem:[%s4896_s3 + $0x60] sm:$0xff] }
  0xad   : > { %v679_v3 = vadd.f32 1e-06, %v671_v1  ;;  %v1007_v1 = vld [vmem:[%s4896_s3 + $0x68] sm:$0xff] }
  0xae   : > { %v681_v4 = vadd.f32 1e-06, %v673_v2  ;;  %v651_v5 = vpop.xlane.xlu0 %650  ;;  %v3550_v2 = vpack.c.bf16 %v1007_v1, %v1006_v0 }
  0xaf   : > { %v657_v6 = vpop.xlane.xlu1 %656  ;;  %3795 = vrsqrt.f32 %v679_v3  ;;  %v672_v7 = vmul.f32 0.020833334, %v651_v5  ;;  %v1008_v3 = vld [vmem:[%s4896_s3 + $0x70] sm:$0xff] }
  0xb0   : > { %v674_v11 = vmul.f32 0.020833334, %v657_v6  ;;  %3797 = vrsqrt.f32 %v681_v4  ;;  %v1009_v4 = vld [vmem:[%s4896_s3 + $0x78] sm:$0xff]  ;;  %v1276_v6 = vld [vmem:[%s4897_s4] sm:$0xff] }
  0xb1   : > { %v680_v12 = vadd.f32 1e-06, %v672_v7  ;;  %v3554_v5 = vpack.c.bf16 %v1009_v4, %v1008_v3  ;;  %v1277_v7 = vld [vmem:[%s4897_s4 + $0x8] sm:$0xff] }
  0xb2   : > { %v682_v13 = vadd.f32 1e-06, %v674_v11  ;;  %v660_v15 = vpop.xlane.xlu0 %659  ;;  %v3590_v11 = vpack.c.bf16 %v1277_v7, %v1276_v6 }
  0xb3   : > { %v663_v18 = vpop.xlane.xlu1 %662  ;;  %3799 = vrsqrt.f32 %v680_v12  ;;  %v675_v19 = vmul.f32 0.020833334, %v660_v15  ;;  %v1279_v15 = vld [vmem:[%s4897_s4 + $0x18] sm:$0xff] }
  0xb4   : > { %v676_v20 = vmul.f32 0.020833334, %v663_v18  ;;  %3801 = vrsqrt.f32 %v682_v13  ;;  %v1278_v13 = vld [vmem:[%s4897_s4 + $0x10] sm:$0xff] }
  0xb5   : > { %v683_v21 = vadd.f32 1e-06, %v675_v19  ;;  %v3594_v19 = vpack.c.bf16 %v1279_v15, %v1278_v13 }
  0xb6   : > { %v684_v22 = vadd.f32 1e-06, %v676_v20  ;;  %v666_v23 = vpop.xlane.xlu0 %665 }
  0xb7   : > { %v669_v26 = vpop.xlane.xlu1 %668  ;;  %3803 = vrsqrt.f32 %v683_v21  ;;  %v677_v27 = vmul.f32 0.020833334, %v666_v23  ;;  %v1281_v23 = vld [vmem:[%s4897_s4 + $0x28] sm:$0xff] }
  0xb8   : > { %v678_v28 = vmul.f32 0.020833334, %v669_v26  ;;  %3805 = vrsqrt.f32 %v684_v22  ;;  %v1280_v22 = vld [vmem:[%s4897_s4 + $0x20] sm:$0xff] }
  0xb9   : > { %v3796_v30 = vpop.eup %3795  ;;  %v685_v31 = vadd.f32 1e-06, %v677_v27 }
  0xba   : > { %v686_v32 = vadd.f32 1e-06, %v678_v28  ;;  %v3798_v35 = vpop.eup %3797  ;;  %v695_v36 = vmul.f32 %v3796_v30, %v4140_v8  ;;  %v999_v8 = vld [vmem:[%s4896_s3 + $0x28] sm:$0xff]  ;;  %v3598_v28 = vpack.c.bf16 %v1281_v23, %v1280_v22  ;;  %v980_v22 = vld [vmem:[%s4894_s1 + $0x10] sm:$0xff] }
  0xbb   : > { %3807 = vrsqrt.f32 %v685_v31  ;;  %v697_v37 = vmul.f32 %v3798_v35, %v4144_v10  ;;  %v3534_v46 = vpack.c.bf16 %v999_v8, %v998_v43  ;;  %v1282_v31 = vld [vmem:[%s4897_s4 + $0x30] sm:$0xff] }
  0xbc   : > { %v710_v38 = vmul.f32 %v4214_v29, %v695_v36  ;;  %3809 = vrsqrt.f32 %v686_v32  ;;  %v1283_v32 = vld [vmem:[%s4897_s4 + $0x38] sm:$0xff] }
  0xbd   : > { %v3800_v40 = vpop.eup %3799  ;;  %v712_v10 = vmul.f32 %v4214_v29, %v697_v37  ;;  %v3602_v35 = vpack.c.bf16 %v1283_v32, %v1282_v31 }
  0xbe   : > { %v3802_v41 = vpop.eup %3801  ;;  %2951 = vmatmul.mubr.msk.f32.vlgmr.msra.gmra.mrb[0].mxu0 %vm645_vm1, %v710_v38  ;;  %3238 = vmatprep.mubr.msk.f32.mxu1 %vm645_vm1, %v710_v38  ;;  %v696_v42 = vmul.f32 %v3800_v40, %v4142_v9  ;;  %v1284_v38 = vld [vmem:[%s4897_s4 + $0x40] sm:$0xff] }
  0xbf   : > { %830 = vmatprep.mubr.f32.mxu0 %v3987_v56  ;;  %v698_v44 = vmul.f32 %v3802_v41, %v4152_v14  ;;  %3529 = vmatpush3.bf16.msra.mxu0 %v4205_v62  ;;  %v1000_v14 = vld [vmem:[%s4896_s3 + $0x30] sm:$0xff] }
  0xc0   : > { %v711_v45 = vmul.f32 %v4214_v29, %v696_v42  ;;  %3531 = vmatprep.subr.bf16.mxu0 %v3530_v39  ;;  %v3538_v53 = vpack.c.bf16 %v1001_v50, %v1000_v14 }
  0xc1   : > { %v3804_v9 = vpop.eup %3803  ;;  %v713_v48 = vmul.f32 %v4214_v29, %v698_v44  ;;  %v1287_v44 = vld [vmem:[%s4897_s4 + $0x58] sm:$0xff] }
  0xc2   : > { %v3806_v47 = vpop.eup %3805  ;;  %2952 = vmatmul.mubr.msk.f32.gmra.mrb[2].mxu0 %vm645_vm1, %v711_v45  ;;  %3239 = vmatmul.mubr.msk.f32.vlgmr.msra.gmra.mrb[0].mxu1 %vm645_vm1, %v711_v45  ;;  %v699_v49 = vmul.f32 %v3804_v9, %v4156_v16 }
  0xc3   : > { %836 = vmatprep.mubr.f32.mxu0 %v3987_v56  ;;  %3241 = vmatprep.mubr.msk.f32.mxu1 %vm645_vm1, %v712_v10  ;;  %v700_v51 = vmul.f32 %v3806_v47, %v4158_v17  ;;  %v1002_v17 = vld [vmem:[%s4896_s3 + $0x40] sm:$0xff] }
  0xc4   : > { %v714_v52 = vmul.f32 %v4214_v29, %v699_v49  ;;  %3561 = vmatpush3.bf16.msra.mxu1 %v4205_v62  ;;  %3533 = vmatpush3.bf16.msra.mxu0 %v3530_v39  ;;  %v1004_v62 = vld [vmem:[%s4896_s3 + $0x50] sm:$0xff] }
  0xc5   : > { %v3808_v16 = vpop.eup %3807  ;;  %3563 = vmatprep.subr.bf16.mxu1 %v3530_v39  ;;  %3535 = vmatprep.subr.bf16.mxu0 %v3534_v46  ;;  %v715_v55 = vmul.f32 %v4214_v29, %v700_v51 }
  0xc6   : > { %v3810_v54 = vpop.eup %3809  ;;  %2953 = vmatmul.mubr.msk.f32.gmra.mrb[4].mxu0 %vm645_vm1, %v712_v10  ;;  %3242 = vmatmul.mubr.msk.f32.gmra.mrb[2].mxu1 %vm645_vm1, %v713_v48  ;;  %v701_v57 = vmul.f32 %v3808_v16, %v4168_v24  ;;  %v3542_v24 = vpack.c.bf16 %v1003_v58, %v1002_v17  ;;  %v1286_v10 = vld [vmem:[%s4897_s4 + $0x50] sm:$0xff]  ;;  %v1289_v16 = vld [vmem:[%s4897_s4 + $0x68] sm:$0xff] }
  0xc7   : > { %842 = vmatprep.mubr.f32.mxu0 %v3987_v56  ;;  %3244 = vmatprep.mubr.msk.f32.mxu1 %vm645_vm1, %v714_v52  ;;  %v702_v59 = vmul.f32 %v3810_v54, %v4170_v25  ;;  %v1005_v25 = vld [vmem:[%s4896_s3 + $0x58] sm:$0xff]  ;;  %v1290_v54 = vld [vmem:[%s4897_s4 + $0x70] sm:$0xff]  ;;  %v979_v17 = vld [vmem:[%s4894_s1 + $0x8] sm:$0xff] }
  0xc8   : > { %v716_v60 = vmul.f32 %v4214_v29, %v701_v57  ;;  %3565 = vmatpush3.bf16.msra.mxu1 %v3530_v39  ;;  %3537 = vmatpush3.bf16.msra.mxu0 %v3534_v46  ;;  %v3546_v63 = vpack.c.bf16 %v1005_v25, %v1004_v62  ;;  %v1285_v39 = vld [vmem:[%s4897_s4 + $0x48] sm:$0xff] }
  0xc9   : > { %3567 = vmatprep.subr.bf16.mxu1 %v3534_v46  ;;  %3539 = vmatprep.subr.bf16.mxu0 %v3538_v53  ;;  %v717_v61 = vmul.f32 %v4214_v29, %v702_v59  ;;  %v3606_v42 = vpack.c.bf16 %v1285_v39, %v1284_v38  ;;  %v987_v58 = vld [vmem:[%s4895_s2 + $0x8] sm:$0xff]  ;;  %v978_v59 = vld [vmem:[%s4894_s1] sm:$0xff] }
  0xca   : > { %2954 = vmatmul.mubr.msk.f32.gmra.mrb[6].mxu0 %vm645_vm1, %v713_v48  ;;  %3245 = vmatmul.mubr.msk.f32.gmra.mrb[4].mxu1 %vm645_vm1, %v715_v55 }
  0xcb   : > { %848 = vmatprep.mubr.f32.mxu0 %v3987_v56  ;;  %3247 = vmatprep.mubr.msk.f32.mxu1 %vm645_vm1, %v716_v60 }
  0xcc   : > { %3569 = vmatpush3.bf16.msra.mxu1 %v3534_v46  ;;  %3541 = vmatpush3.bf16.msra.mxu0 %v3538_v53  ;;  %v3610_v46 = vpack.c.bf16 %v1287_v44, %v1286_v10 }
  0xcd   : > { %3571 = vmatprep.subr.bf16.mxu1 %v3538_v53  ;;  %3543 = vmatprep.subr.bf16.mxu0 %v3542_v24 }
  0xce   : > { %2955 = vmatmul.mubr.msk.f32.gmra.mrb[8].mxu0 %vm645_vm1, %v714_v52  ;;  %3248 = vmatmul.mubr.msk.f32.gmra.mrb[6].mxu1 %vm645_vm1, %v717_v61  ;;  %v1288_v52 = vld [vmem:[%s4897_s4 + $0x60] sm:$0xff] }
  0xcf   : > { %854 = vmatprep.mubr.f32.mxu0 %v3987_v56 }
  0xd0   : > { %3573 = vmatpush3.bf16.msra.mxu1 %v3538_v53  ;;  %3545 = vmatpush3.bf16.msra.mxu0 %v3542_v24  ;;  %v3614_v53 = vpack.c.bf16 %v1289_v16, %v1288_v52 }
  0xd1   : > { %3575 = vmatprep.subr.bf16.mxu1 %v3542_v24  ;;  %3547 = vmatprep.subr.bf16.mxu0 %v3546_v63 }
  0xd2   : > { %2956 = vmatmul.mubr.msk.f32.gmra.mrb[10].mxu0 %vm645_vm1, %v715_v55  ;;  %v1291_v55 = vld [vmem:[%s4897_s4 + $0x78] sm:$0xff] }
  0xd3   : > { %860 = vmatprep.mubr.f32.mxu0 %v3987_v56  ;;  %v3618_v57 = vpack.c.bf16 %v1291_v55, %v1290_v54 }
  0xd4   : > { %3577 = vmatpush3.bf16.msra.mxu1 %v3542_v24  ;;  %3549 = vmatpush3.bf16.msra.mxu0 %v3546_v63 }
  0xd5   : > { %3579 = vmatprep.subr.bf16.mxu1 %v3546_v63  ;;  %3551 = vmatprep.subr.bf16.mxu0 %v3550_v2 }
  0xd6   : > { %2957 = vmatmul.mubr.msk.f32.gmra.mrb[12].mxu0 %vm645_vm1, %v716_v60  ;;  %v986_v60 = vld [vmem:[%s4895_s2] sm:$0xff] }
  0xd7   : > { %866 = vmatprep.mubr.f32.mxu0 %v3987_v56 }
  0xd8   : > { %3581 = vmatpush3.bf16.msra.mxu1 %v3546_v63  ;;  %3553 = vmatpush3.bf16.msra.mxu0 %v3550_v2 }
  0xd9   : > { %3583 = vmatprep.subr.bf16.mxu1 %v3550_v2  ;;  %3555 = vmatprep.subr.bf16.mxu0 %v3554_v5 }
  0xda   : > { %2958 = vmatmul.mubr.msk.f32.gmra.mrb[14].mxu0 %vm645_vm1, %v717_v61 }
  0xdc   : > { %3585 = vmatpush3.bf16.msra.mxu1 %v3550_v2  ;;  %3557 = vmatpush3.bf16.msra.mxu0 %v3554_v5 }
  0xdd   : > { %3587 = vmatprep.subr.bf16.mxu1 %v3554_v5  ;;  %3591 = vmatprep.subr.bf16.mxu0 %v3590_v11 }
  0xe0   : > { %3589 = vmatpush3.bf16.msra.mxu1 %v3554_v5 }
 0x191   : > { %v4305_v12 = vpop.f32.mrb[0].mxu0 }
 0x192   : > { %v4313_v18 = vpop.f32.mrb[1].mxu0  ;;  %3282 = vmatprep.mubr.f32.mxu0 %v4305_v12  ;;  %v1010_v0 = vmul.f32 %v978_v59, %v4305_v12  ;;  %v989_v12 = vld [vmem:[%s4895_s2 + $0x18] sm:$0xff] }
 0x193   : > { %3326 = vmatprep.mubr.f32.mxu1 %v4313_v18  ;;  %v1139_v5 = vmul.f32 %v978_v59, %v4313_v18  ;;  %v988_v18 = vld [vmem:[%s4895_s2 + $0x10] sm:$0xff] }
 0x195   : > { %v4317_v20 = vpop.f32.mrb[2].mxu0  ;;  %v4319_v21 = vpop.f32.mrb[0].mxu1 }
 0x196   : > { %v4327_v26 = vpop.f32.mrb[3].mxu0  ;;  %v4329_v27 = vpop.f32.mrb[1].mxu1  ;;  %3283 = vmatmul.mubr.f32.vlgmr.msra.gmra.mrb[16].mxu0 %v4317_v20  ;;  %v1011_v61 = vmul.f32 %v979_v17, %v4317_v20 }
 0x197   : > { %3327 = vmatmul.mubr.f32.vlgmr.msra.gmra.mrb[8].mxu1 %v4327_v26  ;;  %3593 = vmatpush3.bf16.msra.mxu0 %v3590_v11  ;;  %v1140_v1 = vmul.f32 %v979_v17, %v4327_v26 }
 0x198   : > { %3595 = vmatprep.subr.bf16.mxu0 %v3594_v19 }
 0x199   : > { %v4333_v29 = vpop.f32.mrb[4].mxu0  ;;  %v4335_v30 = vpop.f32.mrb[2].mxu1 }
 0x19a   : > { %v4343_v33 = vpop.f32.mrb[5].mxu0  ;;  %3285 = vmatprep.mubr.f32.mxu0 %v4333_v29  ;;  %v4346_v34 = vpop.f32.mrb[3].mxu1  ;;  %v1012_v38 = vmul.f32 %v980_v22, %v4333_v29  ;;  %v991_v29 = vld [vmem:[%s4895_s2 + $0x28] sm:$0xff] }
 0x19b   : > { %3329 = vmatprep.mubr.f32.mxu1 %v4343_v33  ;;  %3597 = vmatpush3.bf16.msra.mxu0 %v3594_v19  ;;  %v981_v19 = vld [vmem:[%s4894_s1 + $0x18] sm:$0xff] }
 0x19c   : > { %3599 = vmatprep.subr.bf16.mxu0 %v3598_v28 }
 0x19d   : > { %v4349_v36 = vpop.f32.mrb[6].mxu0  ;;  %v4351_v37 = vpop.f32.mrb[4].mxu1 }
 0x19e   : > { %v4359_v40 = vpop.f32.mrb[7].mxu0  ;;  %3286 = vmatmul.mubr.f32.gmra.mrb[18].mxu0 %v4349_v36  ;;  %v4362_v41 = vpop.f32.mrb[5].mxu1 }
 0x19f   : > { %3330 = vmatmul.mubr.f32.gmra.mrb[10].mxu1 %v4359_v40  ;;  %3601 = vmatpush3.bf16.msra.mxu0 %v3598_v28  ;;  %v1013_v28 = vmul.f32 %v981_v19, %v4349_v36  ;;  %v1142_v39 = vmul.f32 %v981_v19, %v4359_v40  ;;  %v983_v36 = vld [vmem:[%s4894_s1 + $0x28] sm:$0xff] }
 0x1a0   : > { %3603 = vmatprep.subr.bf16.mxu0 %v3602_v35 }
 0x1a1   : > { %v4365_v43 = vpop.f32.mrb[8].mxu0  ;;  %v4367_v8 = vpop.f32.mrb[6].mxu1 }
 0x1a2   : > { %v4375_v45 = vpop.f32.mrb[9].mxu0  ;;  %3288 = vmatprep.mubr.f32.mxu0 %v4365_v43  ;;  %v4378_v9 = vpop.f32.mrb[7].mxu1 }
 0x1a3   : > { %3332 = vmatprep.mubr.f32.mxu1 %v4375_v45  ;;  %3605 = vmatpush3.bf16.msra.mxu0 %v3602_v35 }
 0x1a4   : > { %3607 = vmatprep.subr.bf16.mxu0 %v3606_v42 }
 0x1a5   : > { %v4381_v47 = vpop.f32.mrb[10].mxu0 }
 0x1a6   : > { %v4383_v48 = vpop.f32.mrb[11].mxu0  ;;  %3289 = vmatmul.mubr.f32.gmra.mrb[20].mxu0 %v4381_v47  ;;  %v1015_v59 = vmul.f32 %v983_v36, %v4381_v47  ;;  %v985_v47 = vld [vmem:[%s4894_s1 + $0x38] sm:$0xff] }
 0x1a7   : > { %3333 = vmatmul.mubr.f32.gmra.mrb[12].mxu1 %v4383_v48  ;;  %3609 = vmatpush3.bf16.msra.mxu0 %v3606_v42 }
 0x1a8   : > { %3611 = vmatprep.subr.bf16.mxu0 %v3610_v46 }
 0x1a9   : > { %v4387_v49 = vpop.f32.mrb[12].mxu0 }
 0x1aa   : > { %v4389_v14 = vpop.f32.mrb[13].mxu0  ;;  %3291 = vmatprep.mubr.f32.mxu0 %v4387_v49 }
 0x1ab   : > { %3335 = vmatprep.mubr.f32.mxu1 %v4389_v14  ;;  %3613 = vmatpush3.bf16.msra.mxu0 %v3610_v46  ;;  %v1141_v46 = vmul.f32 %v980_v22, %v4343_v33  ;;  %v990_v33 = vld [vmem:[%s4895_s2 + $0x20] sm:$0xff] }
 0x1ac   : > { %3615 = vmatprep.subr.bf16.mxu0 %v3614_v53 }
 0x1ad   : > { %v4393_v50 = vpop.f32.mrb[14].mxu0 }
 0x1ae   : > { %v4395_v51 = vpop.f32.mrb[15].mxu0  ;;  %3292 = vmatmul.mubr.f32.gmra.mrb[22].mxu0 %v4393_v50  ;;  %v1017_v19 = vmul.f32 %v985_v47, %v4393_v50 }
 0x1af   : > { %3336 = vmatmul.mubr.f32.gmra.mrb[14].mxu1 %v4395_v51  ;;  %3617 = vmatpush3.bf16.msra.mxu0 %v3614_v53 }
 0x1b0   : > { %3619 = vmatprep.subr.bf16.mxu0 %v3618_v57 }
 0x1b3   : > { %3621 = vmatpush3.bf16.msra.mxu0 %v3618_v57  ;;  %v982_v57 = vld [vmem:[%s4894_s1 + $0x20] sm:$0xff] }
 0x269   : > { %v3284_v24 = vpop.f32.mrb[16].mxu0 }
 0x26a   : > { %v1124_v62 = vmul.f32 %v3284_v24, %v987_v58  ;;  %v1084_v25 = vpop.f32.mrb[17].mxu0  ;;  %v3328_v63 = vpop.f32.mrb[8].mxu1 }
 0x26b   : > { %v1123_v2 = vmul.f32 %v1084_v25, %v986_v60  ;;  %v1253_v3 = vmul.f32 %v3328_v63, %v987_v58  ;;  %v1213_v4 = vpop.f32.mrb[9].mxu1  ;;  %v1144_v25 = vmul.f32 %v983_v36, %v4383_v48 }
 0x26c   : > { %v1132_v6 = vadd.f32 %v1124_v62, %v1011_v61  ;;  %v1252_v7 = vmul.f32 %v1213_v4, %v986_v60  ;;  %v1014_v62 = vmul.f32 %v982_v57, %v4365_v43  ;;  %v993_v43 = vld [vmem:[%s4895_s2 + $0x38] sm:$0xff] }
 0x26d   : > { %v1131_v11 = vadd.f32 %v1123_v2, %v1010_v0  ;;  %v1261_v13 = vadd.f32 %v1253_v3, %v1140_v1  ;;  %v1143_v2 = vmul.f32 %v982_v57, %v4375_v45  ;;  %v992_v45 = vld [vmem:[%s4895_s2 + $0x30] sm:$0xff] }
 0x26e   : > { %v1260_v15 = vadd.f32 %v1252_v7, %v1139_v5 }
 0x26f   : > { %v1269_v20 = vmul.f32 %v1261_v13, %v1132_v6 }
 0x270   : > { %v1268_v23 = vmul.f32 %v1260_v15, %v1131_v11  ;;  %v984_v11 = vld [vmem:[%s4894_s1 + $0x30] sm:$0xff] }
 0x271   : > { %v3287_v26 = vpop.f32.mrb[18].mxu0 }
 0x272   : > { %v1126_v31 = vmul.f32 %v3287_v26, %v989_v12  ;;  %v1094_v32 = vpop.f32.mrb[19].mxu0  ;;  %v3331_v35 = vpop.f32.mrb[10].mxu1  ;;  %3370 = vmatprep.mubr.f32.mxu0 %v1268_v23  ;;  %v1146_v23 = vmul.f32 %v985_v47, %v4395_v51 }
 0x273   : > { %v1125_v42 = vmul.f32 %v1094_v32, %v988_v18  ;;  %v1255_v10 = vmul.f32 %v3331_v35, %v989_v12  ;;  %v1223_v44 = vpop.f32.mrb[11].mxu1  ;;  %3371 = vmatmul.mubr.f32.vlgmr.msra.gmra.mrb[24].mxu0 %v1269_v20  ;;  %v1145_v32 = vmul.f32 %v984_v11, %v4389_v14 }
 0x274   : > { %v1134_v52 = vadd.f32 %v1126_v31, %v1013_v28  ;;  %v1254_v16 = vmul.f32 %v1223_v44, %v988_v18  ;;  %v1016_v18 = vmul.f32 %v984_v11, %v4387_v49 }
 0x275   : > { %v1133_v53 = vadd.f32 %v1125_v42, %v1012_v38  ;;  %v1263_v54 = vadd.f32 %v1255_v10, %v1142_v39 }
 0x276   : > { %v1262_v55 = vadd.f32 %v1254_v16, %v1141_v46 }
 0x277   : > { %v1271_v40 = vmul.f32 %v1263_v54, %v1134_v52 }
 0x278   : > { %v1270_v17 = vmul.f32 %v1262_v55, %v1133_v53 }
 0x279   : > { %v3290_v58 = vpop.f32.mrb[20].mxu0 }
 0x27a   : > { %v1128_v60 = vmul.f32 %v3290_v58, %v991_v29  ;;  %v1104_v24 = vpop.f32.mrb[21].mxu0  ;;  %v3334_v61 = vpop.f32.mrb[12].mxu1  ;;  %3373 = vmatprep.mubr.f32.mxu0 %v1270_v17 }
 0x27b   : > { %v1127_v63 = vmul.f32 %v1104_v24, %v990_v33  ;;  %v1257_v0 = vmul.f32 %v3334_v61, %v991_v29  ;;  %v1233_v1 = vpop.f32.mrb[13].mxu1  ;;  %3374 = vmatmul.mubr.f32.gmra.mrb[26].mxu0 %v1271_v40  ;;  %v1728_v61 = vld [vmem:[%s4101_s30 + $0x68] sm:$0xff] }
 0x27c   : > { %v1136_v3 = vadd.f32 %v1128_v60, %v1015_v59  ;;  %v1256_v4 = vmul.f32 %v1233_v1, %v990_v33  ;;  %v1446_v59 = vld [vmem:[%s4898_s5] sm:$0xff]  ;;  %v1447_v60 = vld [vmem:[%s4898_s5 + $0x8] sm:$0xf] }
 0x27d   : > { %v1135_v5 = vadd.f32 %v1127_v63, %v1014_v62  ;;  %v1265_v6 = vadd.f32 %v1257_v0, %v1144_v25  ;;  %v3622_v24 = vpack.c.bf16 %v1447_v60, %v1446_v59  ;;  %v1581_v62 = vld [vmem:[%s4919_s15] sm:$0xff]  ;;  %v1582_v25 = vld [vmem:[%s4919_s15 + $0x8] sm:$0xf]  ;;  %v1726_v59 = vld [vmem:[%s4101_s30 + $0x58] sm:$0xff] }
 0x27e   : > { %v1264_v7 = vadd.f32 %v1256_v4, %v1143_v2  ;;  %v3628_v63 = vpack.c.bf16 %v1582_v25, %v1581_v62  ;;  %v1729_v25 = vld [vmem:[%s4101_s30 + $0x70] sm:$0xff] }
 0x27f   : > { %v1273_v48 = vmul.f32 %v1265_v6, %v1136_v3  ;;  %3624 = vmatprep.subr.msk.bf16.mxu1 %vm4489_vm5, %v3622_v24 }
 0x280   : > { %v1272_v13 = vmul.f32 %v1264_v7, %v1135_v5  ;;  %3627 = vmatpush3.bf16.msk.msra.mxu1 %vm4489_vm5, %v3622_v24  ;;  %v1727_v24 = vld [vmem:[%s4101_s30 + $0x60] sm:$0xff] }
 0x281   : > { %v3293_v15 = vpop.f32.mrb[22].mxu0  ;;  %3630 = vmatprep.subr.msk.bf16.mxu1 %vm4489_vm5, %v3628_v63  ;;  %v3658_v62 = vpack.c.bf16 %v1728_v61, %v1727_v24 }
 0x282   : > { %v1130_v20 = vmul.f32 %v3293_v15, %v993_v43  ;;  %v1114_v12 = vpop.f32.mrb[23].mxu0  ;;  %v3337_v22 = vpop.f32.mrb[14].mxu1  ;;  %3376 = vmatprep.mubr.f32.mxu0 %v1272_v13 }
 0x283   : > { %v1129_v26 = vmul.f32 %v1114_v12, %v992_v45  ;;  %v1259_v28 = vmul.f32 %v3337_v22, %v993_v43  ;;  %v1243_v31 = vpop.f32.mrb[15].mxu1  ;;  %3377 = vmatmul.mubr.f32.gmra.mrb[28].mxu0 %v1273_v48 }
 0x284   : > { %v1138_v35 = vadd.f32 %v1130_v20, %v1017_v19  ;;  %v1258_v38 = vmul.f32 %v1243_v31, %v992_v45 }
 0x285   : > { %v1137_v39 = vadd.f32 %v1129_v26, %v1016_v18  ;;  %v1267_v42 = vadd.f32 %v1259_v28, %v1146_v23 }
 0x286   : > { %v1266_v10 = vadd.f32 %v1258_v38, %v1145_v32 }
 0x287   : > { %v1275_v50 = vmul.f32 %v1267_v42, %v1138_v35 }
 0x288   : > { %v1274_v44 = vmul.f32 %v1266_v10, %v1137_v39 }
 0x28a   : > { %3379 = vmatprep.mubr.f32.mxu0 %v1274_v44 }
 0x28b   : > { %3380 = vmatmul.mubr.f32.gmra.mrb[30].mxu0 %v1275_v50 }
 0x346   : > { %v3372_v46 = vpop.f32.mrb[24].mxu0 }
 0x347   : > { %v1358_v49 = vpop.f32.mrb[25].mxu0  ;;  %v1401_v51 = vsel %vm1397_vm2, %v3372_v46, -inf }
 0x348   : > { %1402 = vmax.xlane.f32.xlu1 %v1401_v51  ;;  %v1398_v52 = vsel %vm1397_vm2, %v1358_v49, -inf }
 0x349   : > { %1399 = vmax.xlane.f32.xlu0 %v1398_v52  ;;  %v1717_v52 = vld [vmem:[%s4101_s30 + $0x10] sm:$0xff] }
 0x34e   : > { %v3375_v16 = vpop.f32.mrb[26].mxu0 }
 0x34f   : > { %v1368_v14 = vpop.f32.mrb[27].mxu0  ;;  %v1407_v53 = vsel %vm1397_vm2, %v3375_v16, -inf }
 0x350   : > { %1408 = vmax.xlane.f32.xlu1 %v1407_v53  ;;  %v1404_v54 = vsel %vm1397_vm2, %v1368_v14, -inf  ;;  %v1719_v53 = vld [vmem:[%s4101_s30 + $0x20] sm:$0xff] }
 0x351   : > { %1405 = vmax.xlane.f32.xlu0 %v1404_v54  ;;  %v1720_v54 = vld [vmem:[%s4101_s30 + $0x28] sm:$0xff] }
 0x356   : > { %v3378_v55 = vpop.f32.mrb[28].mxu0 }
 0x357   : > { %v1378_v36 = vpop.f32.mrb[29].mxu0  ;;  %v1413_v29 = vsel %vm1397_vm2, %v3378_v55, -inf }
 0x358   : > { %1414 = vmax.xlane.f32.xlu1 %v1413_v29  ;;  %v1410_v40 = vsel %vm1397_vm2, %v1378_v36, -inf  ;;  %v1722_v29 = vld [vmem:[%s4101_s30 + $0x38] sm:$0xff] }
 0x359   : > { %1411 = vmax.xlane.f32.xlu0 %v1410_v40 }
 0x35e   : > { %v3381_v57 = vpop.f32.mrb[30].mxu0 }
 0x35f   : > { %v1388_v33 = vpop.f32.mrb[31].mxu0  ;;  %v1419_v17 = vsel %vm1397_vm2, %v3381_v57, -inf }
 0x360   : > { %1420 = vmax.xlane.f32.xlu1 %v1419_v17  ;;  %v1416_v58 = vsel %vm1397_vm2, %v1388_v33, -inf }
 0x361   : > { %1417 = vmax.xlane.f32.xlu0 %v1416_v58  ;;  %v1725_v58 = vld [vmem:[%s4101_s30 + $0x50] sm:$0xff] }
 0x362   : > { %v3654_v60 = vpack.c.bf16 %v1726_v59, %v1725_v58 }
 0x3d5   : > { %v1403_v0 = vpop.xlane.xlu1 %1402 }
 0x3d6   : > { %v1423_v1 = vsub.f32 %v3372_v46, %v1403_v0  ;;  %v1400_v2 = vpop.xlane.xlu0 %1399  ;;  %v1715_v46 = vld [vmem:[%s4101_s30] sm:$0xff] }
 0x3d7   : > { %v1422_v3 = vsub.f32 %v1358_v49, %v1400_v2  ;;  %v1716_v49 = vld [vmem:[%s4101_s30 + $0x8] sm:$0xff] }
 0x3d8   : > { %v1432_v4 = vmul.f32 1.442695, %v1423_v1  ;;  %v3634_v51 = vpack.c.bf16 %v1716_v49, %v1715_v46 }
 0x3d9   : > { %v1430_v5 = vmul.f32 1.442695, %v1422_v3 }
 0x3da   : > { %3635 = vmatprep.subr.bf16.mxu0 %v3634_v51 }
 0x3db   : > { %3811 = vpow2.f32 %v1430_v5  ;;  %3637 = vmatpush3.bf16.msra.mxu0 %v3634_v51 }
 0x3dc   : > { %3813 = vpow2.f32 %v1432_v4 }
 0x3dd   : > { %v1409_v6 = vpop.xlane.xlu1 %1408 }
 0x3de   : > { %v1425_v7 = vsub.f32 %v3375_v16, %v1409_v6  ;;  %v1406_v47 = vpop.xlane.xlu0 %1405  ;;  %v1718_v16 = vld [vmem:[%s4101_s30 + $0x18] sm:$0xff] }
 0x3df   : > { %v1424_v43 = vsub.f32 %v1368_v14, %v1406_v47  ;;  %v3638_v14 = vpack.c.bf16 %v1718_v16, %v1717_v52 }
 0x3e0   : > { %v1436_v48 = vmul.f32 1.442695, %v1425_v7 }
 0x3e1   : > { %v1434_v11 = vmul.f32 1.442695, %v1424_v43  ;;  %3639 = vmatprep.subr.bf16.mxu0 %v3638_v14 }
 0x3e2   : > { %3641 = vmatpush3.bf16.msra.mxu0 %v3638_v14 }
 0x3e3   : > { %3815 = vpow2.f32 %v1434_v11 }
 0x3e4   : > { %3817 = vpow2.f32 %v1436_v48 }
 0x3e5   : > { %v3812_v45 = vpop.eup %3811  ;;  %v1415_v13 = vpop.xlane.xlu1 %1414 }
 0x3e6   : > { %v3814_v15 = vpop.eup %3813  ;;  %v1427_v19 = vsub.f32 %v3378_v55, %v1415_v13  ;;  %3386 = vmatprep.mubr.msk.f32.mxu1 %vm1397_vm2, %v3812_v45  ;;  %v1412_v20 = vpop.xlane.xlu0 %1411  ;;  %v3642_v55 = vpack.c.bf16 %v1720_v54, %v1719_v53  ;;  %v3955_v53 = vld [vmem:[#allocation2 + $0x8] sm:$0xff] }
 0x3e7   : > { %v1426_v12 = vsub.f32 %v1378_v36, %v1412_v20  ;;  %3387 = vmatmul.mubr.msk.f32.vlgmr.msra.gmra.mrb[16].mxu1 %vm1397_vm2, %v3814_v15  ;;  %v1721_v36 = vld [vmem:[%s4101_s30 + $0x30] sm:$0xff] }
 0x3e8   : > { %v1440_v22 = vmul.f32 1.442695, %v1427_v19  ;;  %3633 = vmatpush3.bf16.msk.msra.mxu1 %vm4489_vm5, %v3628_v63  ;;  %3643 = vmatprep.subr.bf16.mxu0 %v3642_v55  ;;  %v3646_v40 = vpack.c.bf16 %v1722_v29, %v1721_v36  ;;  %v1730_v63 = vld [vmem:[%s4101_s30 + $0x78] sm:$0xff] }
 0x3e9   : > { %v1438_v18 = vmul.f32 1.442695, %v1426_v12  ;;  %3645 = vmatpush3.bf16.msra.mxu0 %v3642_v55  ;;  %v3662_v0 = vpack.c.bf16 %v1730_v63, %v1729_v25  ;;  %v3956_v55 = vld [vmem:[#allocation2] sm:$0xff] }
 0x3ea   : > { %3647 = vmatprep.subr.bf16.mxu0 %v3646_v40 }
 0x3eb   : > { %3819 = vpow2.f32 %v1438_v18 }
 0x3ec   : > { %3821 = vpow2.f32 %v1440_v22 }
 0x3ed   : > { %v3816_v23 = vpop.eup %3815  ;;  %v1421_v26 = vpop.xlane.xlu1 %1420  ;;  %3649 = vmatpush3.bf16.msra.mxu0 %v3646_v40 }
 0x3ee   : > { %v3818_v28 = vpop.eup %3817  ;;  %v1429_v31 = vsub.f32 %v3381_v57, %v1421_v26  ;;  %3389 = vmatprep.mubr.msk.f32.mxu1 %vm1397_vm2, %v3816_v23  ;;  %v1418_v32 = vpop.xlane.xlu0 %1417  ;;  %v1723_v57 = vld [vmem:[%s4101_s30 + $0x40] sm:$0xff] }
 0x3ef   : > { %v1428_v35 = vsub.f32 %v1388_v33, %v1418_v32  ;;  %3390 = vmatmul.mubr.msk.f32.gmra.mrb[18].mxu1 %vm1397_vm2, %v3818_v28  ;;  %v1724_v33 = vld [vmem:[%s4101_s30 + $0x48] sm:$0xff] }
 0x3f0   : > { %v1444_v38 = vmul.f32 1.442695, %v1429_v31  ;;  %v3650_v17 = vpack.c.bf16 %v1724_v33, %v1723_v57 }
 0x3f1   : > { %v1442_v39 = vmul.f32 1.442695, %v1428_v35 }
 0x3f2   : > { %3651 = vmatprep.subr.bf16.mxu0 %v3650_v17 }
 0x3f3   : > { %3823 = vpow2.f32 %v1442_v39  ;;  %3653 = vmatpush3.bf16.msra.mxu0 %v3650_v17  ;;  %v3958_v17 = vld [vmem:[#allocation2 + $0x10] sm:$0xff] }
 0x3f4   : > { %3825 = vpow2.f32 %v1444_v38  ;;  %3655 = vmatprep.subr.bf16.mxu0 %v3654_v60 }
 0x3f5   : > { %v3820_v42 = vpop.eup %3819 }
 0x3f6   : > { %v3822_v10 = vpop.eup %3821  ;;  %3392 = vmatprep.mubr.msk.f32.mxu1 %vm1397_vm2, %v3820_v42 }
 0x3f7   : > { %3393 = vmatmul.mubr.msk.f32.gmra.mrb[20].mxu1 %vm1397_vm2, %v3822_v10  ;;  %3657 = vmatpush3.bf16.msra.mxu0 %v3654_v60 }
 0x3f8   : > { %3659 = vmatprep.subr.bf16.mxu0 %v3658_v62 }
 0x3fb   : > { %3661 = vmatpush3.bf16.msra.mxu0 %v3658_v62  ;;  %v3959_v62 = vld [vmem:[#allocation2 + $0x28] sm:$0xff] }
 0x3fc   : > { %3663 = vmatprep.subr.bf16.mxu0 %v3662_v0 }
 0x3fd   : > { %v3824_v50 = vpop.eup %3823 }
 0x3fe   : > { %v3826_v44 = vpop.eup %3825  ;;  %3395 = vmatprep.mubr.msk.f32.mxu1 %vm1397_vm2, %v3824_v50 }
 0x3ff   : > { %3396 = vmatmul.mubr.msk.f32.gmra.mrb[22].mxu1 %vm1397_vm2, %v3826_v44  ;;  %3665 = vmatpush3.bf16.msra.mxu0 %v3662_v0 }
 0x400   : > { %3402 = vmatprep.mubr.msk.f32.mxu1 %vm1397_vm2, %v3812_v45 }
 0x403   : > { %3403 = vmatmul.mubr.msk.f32.vlgmr.msra.gmra.mrb[24].mxu1 %vm1397_vm2, %v3814_v15 }
 0x404   : > { %3405 = vmatprep.mubr.msk.f32.mxu1 %vm1397_vm2, %v3816_v23 }
 0x407   : > { %3406 = vmatmul.mubr.msk.f32.gmra.mrb[26].mxu1 %vm1397_vm2, %v3818_v28 }
 0x408   : > { %3408 = vmatprep.mubr.msk.f32.mxu1 %vm1397_vm2, %v3820_v42 }
 0x40b   : > { %3409 = vmatmul.mubr.msk.f32.gmra.mrb[28].mxu1 %vm1397_vm2, %v3822_v10 }
 0x40c   : > { %3411 = vmatprep.mubr.msk.f32.mxu1 %vm1397_vm2, %v3824_v50 }
 0x40f   : > { %3412 = vmatmul.mubr.msk.f32.gmra.mrb[30].mxu1 %vm1397_vm2, %v3826_v44 }
 0x410   : > { %2047 = vmatprep.mubr.f32.mxu1 %v3987_v56 }
 0x4ba   : > { %v3388_v1 = vpop.f32.mrb[16].mxu1 }
 0x4bb   : > { %v1542_v2 = vpop.f32.mrb[17].mxu1 }
 0x4c2   : > { %v3391_v3 = vpop.f32.mrb[18].mxu1 }
 0x4c3   : > { %v1552_v4 = vpop.f32.mrb[19].mxu1 }
 0x4ca   : > { %v3394_v5 = vpop.f32.mrb[20].mxu1 }
 0x4cb   : > { %v1562_v6 = vpop.f32.mrb[21].mxu1 }
 0x4d2   : > { %v3397_v7 = vpop.f32.mrb[22].mxu1 }
 0x4d3   : > { %v1572_v47 = vpop.f32.mrb[23].mxu1 }
 0x4d6   : > { %v3404_v43 = vpop.f32.mrb[24].mxu1 }
 0x4d7   : > { %3827 = vrcp.f32 %v3404_v43  ;;  %v1652_v48 = vpop.f32.mrb[25].mxu1 }
 0x4d8   : > { %3829 = vrcp.f32 %v1652_v48 }
 0x4da   : > { %v3407_v11 = vpop.f32.mrb[26].mxu1 }
 0x4db   : > { %3831 = vrcp.f32 %v3407_v11  ;;  %v1662_v45 = vpop.f32.mrb[27].mxu1  ;;  %v3962_v11 = vld [vmem:[#allocation2 + $0x30] sm:$0xff] }
 0x4dc   : > { %3833 = vrcp.f32 %v1662_v45 }
 0x4de   : > { %v3410_v13 = vpop.f32.mrb[28].mxu1 }
 0x4df   : > { %3835 = vrcp.f32 %v3410_v13  ;;  %v1672_v15 = vpop.f32.mrb[29].mxu1 }
 0x4e0   : > { %3837 = vrcp.f32 %v1672_v15 }
 0x4e1   : > { %v3828_v19 = vpop.eup %3827 }
 0x4e2   : > { %v3830_v20 = vpop.eup %3829  ;;  %v1694_v12 = vmul.f32 %v3828_v19, %v3388_v1  ;;  %v3413_v22 = vpop.f32.mrb[30].mxu1  ;;  %v3960_v1 = vld [vmem:[#allocation2 + $0x20] sm:$0xff] }
 0x4e3   : > { %3839 = vrcp.f32 %v3413_v22  ;;  %v1682_v18 = vpop.f32.mrb[31].mxu1  ;;  %v1692_v23 = vmul.f32 %v3830_v20, %v1542_v2  ;;  %v1924_v22 = vld [vmem:[%s4108_s13 + $0x8] sm:$0xff] }
 0x4e4   : > { %3841 = vrcp.f32 %v1682_v18  ;;  %v1708_v26 = vmul.f32 %v4319_v21, %v1694_v12  ;;  %v1930_v18 = vld [vmem:[%s4108_s13 + $0x38] sm:$0xff] }
 0x4e5   : > { %v3832_v28 = vpop.eup %3831  ;;  %v1707_v31 = vmul.f32 %v1692_v23, %v4329_v27  ;;  %v1926_v23 = vld [vmem:[%s4108_s13 + $0x18] sm:$0xff] }
 0x4e6   : > { %v3834_v32 = vpop.eup %3833  ;;  %v1698_v35 = vmul.f32 %v3832_v28, %v3391_v3  ;;  %v1923_v28 = vld [vmem:[%s4108_s13] sm:$0xff] }
 0x4e7   : > { %3446 = vmatprep.mubr.f32.mxu0 %v1707_v31  ;;  %v1696_v38 = vmul.f32 %v3834_v32, %v1552_v4  ;;  %v1929_v31 = vld [vmem:[%s4108_s13 + $0x30] sm:$0xff]  ;;  %v1932_v32 = vld [vmem:[%s4108_s13 + $0x48] sm:$0xff] }
 0x4e8   : > { %3447 = vmatmul.mubr.f32.vlgmr.msra.gmra.mrb[32].mxu0 %v1708_v26  ;;  %v1710_v39 = vmul.f32 %v4335_v30, %v1698_v35  ;;  %v3666_v26 = vpack.c.bf16 %v1930_v18, %v1924_v22  ;;  %v3668_v35 = vpack.c.bf16 %v1929_v31, %v1923_v28  ;;  %v1933_v28 = vld [vmem:[%s4108_s13 + $0x50] sm:$0xff] }
 0x4e9   : > { %v3836_v42 = vpop.eup %3835  ;;  %v1709_v10 = vmul.f32 %v1696_v38, %v4346_v34  ;;  %v3678_v38 = vpack.c.bf16 %v1932_v32, %v1926_v23  ;;  %v4622_v32 = vld [vmem:[%s591_s20] ss:$0 sm:$0xff]  ;;  %s4920_s20 = sld [smem:[#allocation7_spill]] (!%p3010_p6) }
 0x4ea   : > { %v3838_v50 = vpop.eup %3837  ;;  %v1702_v44 = vmul.f32 %v3836_v42, %v3394_v5  ;;  %v1931_v42 = vld [vmem:[%s4108_s13 + $0x40] sm:$0xff]  ;;  %3667 = vmatprep.subr.bf16.mxu1 %v3666_v26 }
 0x4eb   : > { %3449 = vmatprep.mubr.f32.mxu0 %v1709_v10  ;;  %v1700_v46 = vmul.f32 %v3838_v50, %v1562_v6  ;;  %3669 = vmatpush1.bf16.msra.mxu1 %v3668_v35  ;;  %v1936_v50 = vld [vmem:[%s4108_s13 + $0x68] sm:$0xff]  ;;  %v1927_v26 = vld [vmem:[%s4108_s13 + $0x20] sm:$0xff] }
 0x4ec   : > { %3450 = vmatmul.mubr.f32.gmra.mrb[34].mxu0 %v1710_v39  ;;  %v1712_v21 = vmul.f32 %v4351_v37, %v1702_v44  ;;  %v1925_v39 = vld [vmem:[%s4108_s13 + $0x10] sm:$0xff]  ;;  %3679 = vmatprep.subr.bf16.mxu0 %v3678_v38  ;;  %v1942_v44 = vld [vmem:[%s4108_s13 + $0x98] sm:$0xff]  ;;  %v1940_v35 = vld [vmem:[%s4108_s13 + $0x88] sm:$0xff] }
 0x4ed   : > { %v3840_v49 = vpop.eup %3839  ;;  %v1711_v27 = vmul.f32 %v1700_v46, %v4362_v41  ;;  %v3680_v10 = vpack.c.bf16 %v1931_v42, %v1925_v39  ;;  %v1938_v46 = vld [vmem:[%s4108_s13 + $0x78] sm:$0xff] }
 0x4ee   : > { %v3842_v51 = vpop.eup %3841  ;;  %v1706_v52 = vmul.f32 %v3840_v49, %v3397_v7  ;;  %v3961_v7 = vld [vmem:[#allocation2 + $0x38] sm:$0xff]  ;;  %v1935_v49 = vld [vmem:[%s4108_s13 + $0x60] sm:$0xff] }
 0x4ef   : > { %3452 = vmatprep.mubr.f32.mxu0 %v1711_v27  ;;  %v1704_v16 = vmul.f32 %v3842_v51, %v1572_v47  ;;  %3681 = vmatpush1.bf16.msra.mxu0 %v3680_v10  ;;  %v1941_v27 = vld [vmem:[%s4108_s13 + $0x90] sm:$0xff]  ;;  %v1944_v51 = vld [vmem:[%s4108_s13 + $0xa8] sm:$0xff]  ;;  %v1946_v38 = vld [vmem:[%s4108_s13 + $0xb8] sm:$0xff] }
 0x4f0   : > { %3453 = vmatmul.mubr.f32.gmra.mrb[36].mxu0 %v1712_v21  ;;  %v1714_v30 = vmul.f32 %v4367_v8, %v1706_v52  ;;  %v3670_v21 = vpack.c.bf16 %v1942_v44, %v1936_v50  ;;  %v3672_v52 = vpack.c.bf16 %v1941_v27, %v1935_v49  ;;  %v3692_v50 = vpack.c.bf16 %v1933_v28, %v1927_v26  ;;  %v2493_v26 = vld [vmem:[%s4113_s19 + $0x18] sm:$0xff]  ;;  %v2523_v28 = vld [vmem:[%s4113_s19 + $0x108] sm:$0xff] }
 0x4f1   : > { %v1713_v14 = vmul.f32 %v1704_v16, %v4378_v9  ;;  %v3957_v9 = vld [vmem:[#allocation2 + $0x18] sm:$0xff]  ;;  %v3682_v16 = vpack.c.bf16 %v1944_v51, %v1938_v46  ;;  %v3694_v49 = vpack.c.bf16 %v1946_v38, %v1940_v35  ;;  %v1939_v51 = vld [vmem:[%s4108_s13 + $0x80] sm:$0xff]  ;;  %v2511_v38 = vld [vmem:[%s4113_s19 + $0xa8] sm:$0xff] }
 0x4f2   : > { %3671 = vmatprep.subr.bf16.mxu1 %v3670_v21  ;;  %v2510_v35 = vld [vmem:[%s4113_s19 + $0xa0] sm:$0xff] }
 0x4f3   : > { %3455 = vmatprep.mubr.f32.mxu0 %v1713_v14  ;;  %v1943_v14 = vld [vmem:[%s4108_s13 + $0xa0] sm:$0xff]  ;;  %3673 = vmatpush1.bf16.msra.mxu1 %v3672_v52  ;;  %v1945_v52 = vld [vmem:[%s4108_s13 + $0xb0] sm:$0xff] }
 0x4f4   : > { %3456 = vmatmul.mubr.f32.gmra.mrb[38].mxu0 %v1714_v30  ;;  %v1937_v30 = vld [vmem:[%s4108_s13 + $0x70] sm:$0xff]  ;;  %3683 = vmatprep.subr.bf16.mxu0 %v3682_v16  ;;  %v1952_v16 = vld [vmem:[%s4108_s13 + $0xe8] sm:$0xff] }
 0x4f5   : > { %2160 = vmatprep.mubr.f32.mxu0 %v3987_v56 }
 0x5bb   : > { %v3448_v34 = vpop.f32.mrb[32].mxu0 }
 0x5bc   : > { %v4549_v54 = vadd.f32 %v3955_v53, %v3448_v34  ;;  %v1797_v37 = vpop.f32.mrb[33].mxu0  ;;  %v3684_v34 = vpack.c.bf16 %v1943_v14, %v1937_v30  ;;  %v1948_v53 = vld [vmem:[%s4108_s13 + $0xc8] sm:$0xff]  ;;  %v1958_v30 = vld [vmem:[%s4108_s13 + $0x118] sm:$0xff] }
 0x5bd   : > { %v4551_v41 = vadd.f32 %v3956_v55, %v1797_v37  ;;  %v1954_v37 = vld [vmem:[%s4108_s13 + $0xf8] sm:$0xff] }
 0x5be   : > { %v1845_v36 = vmul.f32 %v4549_v54, %v4549_v54  ;;  %v1950_v55 = vld [vmem:[%s4108_s13 + $0xd8] sm:$0xff]  ;;  %3685 = vmatpush1.bf16.msra.mxu0 %v3684_v34 }
 0x5bf   : > { %v3451_v29 = vpop.f32.mrb[34].mxu0  ;;  %v1844_v8 = vmul.f32 %v4551_v41, %v4551_v41 }
 0x5c0   : > { %v4557_v40 = vadd.f32 %v3957_v9, %v3451_v29  ;;  %v1807_v57 = vpop.f32.mrb[35].mxu0  ;;  %v1855_v33 = vsel %vm645_vm1, %v1845_v36, 0.0  ;;  %v3674_v36 = vpack.c.bf16 %v1954_v37, %v1948_v53  ;;  %v1947_v29 = vld [vmem:[%s4108_s13 + $0xc0] sm:$0xff]  ;;  %v1956_v9 = vld [vmem:[%s4108_s13 + $0x108] sm:$0xff] }
 0x5c1   : > { %v4560_v58 = vadd.f32 %v3958_v17, %v1807_v57  ;;  %1856 = vadd.xlane.f32.xlu1 %v1855_v33  ;;  %v1852_v59 = vsel %vm645_vm1, %v1844_v8, 0.0  ;;  %v1953_v8 = vld [vmem:[%s4108_s13 + $0xf0] sm:$0xff]  ;;  %v3686_v33 = vpack.c.bf16 %v1956_v9, %v1950_v55  ;;  %v3696_v55 = vpack.c.bf16 %v1945_v52, %v1939_v51  ;;  %v2526_v51 = vld [vmem:[%s4113_s19 + $0x120] sm:$0xff] }
 0x5c2   : > { %1853 = vadd.xlane.f32.xlu0 %v1852_v59  ;;  %v1847_v60 = vmul.f32 %v4557_v40, %v4557_v40  ;;  %v3676_v57 = vpack.c.bf16 %v1953_v8, %v1947_v29  ;;  %v1949_v17 = vld [vmem:[%s4108_s13 + $0xd0] sm:$0xff]  ;;  %v1955_v59 = vld [vmem:[%s4108_s13 + $0x100] sm:$0xff]  ;;  %3675 = vmatprep.subr.bf16.mxu1 %v3674_v36  ;;  %v3698_v29 = vpack.c.bf16 %v1958_v30, %v1952_v16  ;;  %v2497_v30 = vld [vmem:[%s4113_s19 + $0x38] sm:$0xff] }
 0x5c3   : > { %v3454_v24 = vpop.f32.mrb[36].mxu0  ;;  %v1846_v61 = vmul.f32 %v4560_v58, %v4560_v58  ;;  %3687 = vmatprep.subr.bf16.mxu0 %v3686_v33  ;;  %v1951_v8 = vld [vmem:[%s4108_s13 + $0xe0] sm:$0xff]  ;;  %v1957_v9 = vld [vmem:[%s4108_s13 + $0x110] sm:$0xff] }
 0x5c4   : > { %v4567_v25 = vadd.f32 %v3959_v62, %v3454_v24  ;;  %v1817_v63 = vpop.f32.mrb[37].mxu0  ;;  %v1861_v0 = vsel %vm645_vm1, %v1847_v60, 0.0  ;;  %v3688_v60 = vpack.c.bf16 %v1955_v59, %v1949_v17  ;;  %3677 = vmatpush1.bf16.msra.mxu1 %v3676_v57  ;;  %v1928_v24 = vld [vmem:[%s4108_s13 + $0x28] sm:$0xff]  ;;  %v3700_v59 = vpack.c.bf16 %v1957_v9, %v1951_v8  ;;  %v2496_v16 = vld [vmem:[%s4113_s19 + $0x30] sm:$0xff]  ;;  %v2498_v8 = vld [vmem:[%s4113_s19 + $0x40] sm:$0xff] }
 0x5c5   : > { %v4570_v2 = vadd.f32 %v3960_v1, %v1817_v63  ;;  %1862 = vadd.xlane.f32.xlu1 %v1861_v0  ;;  %v1858_v3 = vsel %vm645_vm1, %v1846_v61, 0.0  ;;  %v1934_v61 = vld [vmem:[%s4108_s13 + $0x58] sm:$0xff]  ;;  %v2499_v9 = vld [vmem:[%s4113_s19 + $0x48] sm:$0xff] }
 0x5c6   : > { %1859 = vadd.xlane.f32.xlu0 %v1858_v3  ;;  %v1849_v4 = vmul.f32 %v4567_v25, %v4567_v25  ;;  %3689 = vmatpush1.bf16.msra.mxu0 %v3688_v60  ;;  %v3690_v62 = vpack.c.bf16 %v1934_v61, %v1928_v24 }
 0x5c7   : > { %v3457_v5 = vpop.f32.mrb[38].mxu0  ;;  %v1848_v6 = vmul.f32 %v4570_v2, %v4570_v2 }
 0x5c8   : > { %v4577_v47 = vadd.f32 %v3961_v7, %v3457_v5  ;;  %v1827_v43 = vpop.f32.mrb[39].mxu0  ;;  %v1867_v48 = vsel %vm645_vm1, %v1849_v4, 0.0  ;;  %3691 = vmatprep.subr.bf16.mxu1 %v3690_v62 }
 0x5c9   : > { %v4580_v45 = vadd.f32 %v3962_v11, %v1827_v43  ;;  %1868 = vadd.xlane.f32.xlu1 %v1867_v48  ;;  %v1864_v13 = vsel %vm645_vm1, %v1848_v6, 0.0 }
 0x5ca   : > { %1865 = vadd.xlane.f32.xlu0 %v1864_v13  ;;  %v1851_v15 = vmul.f32 %v4577_v47, %v4577_v47 }
 0x5cb   : > { %v1850_v19 = vmul.f32 %v4580_v45, %v4580_v45 }
 0x5cc   : > { %v1873_v20 = vsel %vm645_vm1, %v1851_v15, 0.0 }
 0x5cd   : > { %1874 = vadd.xlane.f32.xlu1 %v1873_v20  ;;  %v1870_v12 = vsel %vm645_vm1, %v1850_v19, 0.0 }
 0x5ce   : > { %1871 = vadd.xlane.f32.xlu0 %v1870_v12 }
 0x64e   : > { %v1857_v63 = vpop.xlane.xlu1 %1856 }
 0x64f   : > { %v1877_v0 = vmul.f32 0.020833334, %v1857_v63  ;;  %v1854_v1 = vpop.xlane.xlu0 %1853 }
 0x650   : > { %v1876_v3 = vmul.f32 0.020833334, %v1854_v1 }
 0x651   : > { %v1885_v4 = vadd.f32 1e-06, %v1877_v0 }
 0x652   : > { %v1884_v5 = vadd.f32 1e-06, %v1876_v3  ;;  %v1863_v6 = vpop.xlane.xlu1 %1862 }
 0x653   : > { %3843 = vrsqrt.f32 %v1885_v4  ;;  %v1860_v7 = vpop.xlane.xlu0 %1859  ;;  %v1879_v43 = vmul.f32 0.020833334, %v1863_v6 }
 0x654   : > { %3845 = vrsqrt.f32 %v1884_v5  ;;  %v1878_v48 = vmul.f32 0.020833334, %v1860_v7 }
 0x655   : > { %v1887_v15 = vadd.f32 1e-06, %v1879_v43 }
 0x656   : > { %v1886_v11 = vadd.f32 1e-06, %v1878_v48  ;;  %v1869_v20 = vpop.xlane.xlu1 %1868  ;;  %v2506_v48 = vld [vmem:[%s4113_s19 + $0x80] sm:$0xff] }
 0x657   : > { %v1866_v13 = vpop.xlane.xlu0 %1865  ;;  %v1881_v12 = vmul.f32 0.020833334, %v1869_v20 }
 0x658   : > { %3847 = vrsqrt.f32 %v1886_v11  ;;  %v1880_v19 = vmul.f32 0.020833334, %v1866_v13  ;;  %v2507_v11 = vld [vmem:[%s4113_s19 + $0x88] sm:$0xff] }
 0x659   : > { %3849 = vrsqrt.f32 %v1887_v15  ;;  %v1889_v42 = vadd.f32 1e-06, %v1881_v12  ;;  %v3702_v13 = vpack.c.bf16 %v2507_v11, %v2506_v48  ;;  %v2490_v15 = vld [vmem:[%s4113_s19] sm:$0xff]  ;;  %v2508_v12 = vld [vmem:[%s4113_s19 + $0x90] sm:$0xff]  ;;  %v2503_v48 = vld [vmem:[%s4113_s19 + $0x68] sm:$0xff] }
 0x65a   : > { %v1888_v22 = vadd.f32 1e-06, %v1880_v19  ;;  %v1875_v46 = vpop.xlane.xlu1 %1874  ;;  %v2491_v19 = vld [vmem:[%s4113_s19 + $0x8] sm:$0xff]  ;;  %v2533_v11 = vld [vmem:[%s4113_s19 + $0x158] sm:$0xff] }
 0x65b   : > { %v1872_v23 = vpop.xlane.xlu0 %1871  ;;  %v1883_v14 = vmul.f32 0.020833334, %v1875_v46  ;;  %v3704_v20 = vpack.c.bf16 %v2491_v19, %v2490_v15  ;;  %3703 = vmatprep.subr.bf16.mxu0 %v3702_v13  ;;  %v2520_v19 = vld [vmem:[%s4113_s19 + $0xf0] sm:$0xff] }
 0x65c   : > { %3851 = vrsqrt.f32 %v1888_v22  ;;  %v1882_v10 = vmul.f32 0.020833334, %v1872_v23  ;;  %v2509_v22 = vld [vmem:[%s4113_s19 + $0x98] sm:$0xff]  ;;  %v2492_v23 = vld [vmem:[%s4113_s19 + $0x10] sm:$0xff] }
 0x65d   : > { %v3844_v18 = vpop.eup %3843  ;;  %3853 = vrsqrt.f32 %v1889_v42  ;;  %v1891_v57 = vadd.f32 1e-06, %v1883_v14  ;;  %v3710_v42 = vpack.c.bf16 %v2511_v38, %v2510_v35  ;;  %v2527_v14 = vld [vmem:[%s4113_s19 + $0x128] sm:$0xff] }
 0x65e   : > { %v3846_v31 = vpop.eup %3845  ;;  %v1901_v21 = vmul.f32 %v3844_v18, %v4549_v54  ;;  %v1890_v34 = vadd.f32 1e-06, %v1882_v10  ;;  %v2522_v18 = vld [vmem:[%s4113_s19 + $0x100] sm:$0xff] }
 0x65f   : > { %v1900_v39 = vmul.f32 %v3846_v31, %v4551_v41  ;;  %v3708_v31 = vpack.c.bf16 %v2493_v26, %v2492_v23  ;;  %v2494_v10 = vld [vmem:[%s4113_s19 + $0x20] sm:$0xff]  ;;  %v2535_v23 = vld [vmem:[%s4113_s19 + $0x168] sm:$0xff] }
 0x660   : > { %v1916_v53 = vmul.f32 %v4622_v32, %v1901_v21  ;;  %3855 = vrsqrt.f32 %v1890_v34  ;;  %v3716_v34 = vpack.c.bf16 %v2497_v30, %v2496_v16 }
 0x661   : > { %v4628_v44 = vmul.f32 %v4622_v32, %v1900_v39  ;;  %3857 = vrsqrt.f32 %v1891_v57  ;;  %v2524_v39 = vld [vmem:[%s4113_s19 + $0x110] sm:$0xff]  ;;  %v2529_v57 = vld [vmem:[%s4113_s19 + $0x138] sm:$0xff] }
 0x662   : > { %v3848_v27 = vpop.eup %3847 }
 0x663   : > { %2986 = vmatmul.mubr.msk.f32.vlgmr.msra.gmra.mrb[32].mxu1 %vm645_vm1, %v4628_v44  ;;  %2994 = vmatmul.mubr.msk.f32.vlgmr.msra.gmra.mrb[40].mxu0 %vm645_vm1, %v4628_v44  ;;  %v1902_v37 = vmul.f32 %v3848_v27, %v4560_v58  ;;  %v3850_v36 = vpop.eup %3849  ;;  %v2513_v27 = vld [vmem:[%s4113_s19 + $0xb8] sm:$0xff] }
 0x664   : > { %3693 = vmatpush1.bf16.msra.mxu1 %v3692_v50  ;;  %2053 = vmatprep.mubr.f32.mxu1 %v3987_v56  ;;  %v1903_v17 = vmul.f32 %v3850_v36, %v4557_v40  ;;  %v2495_v50 = vld [vmem:[%s4113_s19 + $0x28] sm:$0xff]  ;;  %v2528_v36 = vld [vmem:[%s4113_s19 + $0x130] sm:$0xff] }
 0x665   : > { %2166 = vmatprep.mubr.f32.mxu0 %v3987_v56  ;;  %3695 = vmatprep.subr.bf16.mxu1 %v3694_v49  ;;  %v1917_v33 = vmul.f32 %v4622_v32, %v1902_v37  ;;  %v3712_v46 = vpack.c.bf16 %v2495_v50, %v2494_v10  ;;  %v2512_v49 = vld [vmem:[%s4113_s19 + $0xb0] sm:$0xff]  ;;  %v2514_v37 = vld [vmem:[%s4113_s19 + $0xc0] sm:$0xff] }
 0x666   : > { %v3852_v60 = vpop.eup %3851  ;;  %v1918_v24 = vmul.f32 %v4622_v32, %v1903_v17  ;;  %3705 = vmatpush3.bf16.msra.mxu0 %v3704_v20  ;;  %v3714_v52 = vpack.c.bf16 %v2513_v27, %v2512_v49  ;;  %v3746_v17 = vpack.c.bf16 %v2529_v57, %v2528_v36  ;;  %v2521_v20 = vld [vmem:[%s4113_s19 + $0xf8] sm:$0xff] }
 0x667   : > { %2987 = vmatmul.mubr.msk.f32.gmra.mrb[34].mxu1 %vm645_vm1, %v1916_v53  ;;  %2995 = vmatmul.mubr.msk.f32.gmra.mrb[42].mxu0 %vm645_vm1, %v1916_v53  ;;  %v1904_v61 = vmul.f32 %v3852_v60, %v4570_v2  ;;  %v3854_v62 = vpop.eup %3853  ;;  %v2517_v60 = vld [vmem:[%s4113_s19 + $0xd8] sm:$0xff] }
 0x668   : > { %2059 = vmatprep.mubr.f32.mxu1 %v3987_v56  ;;  %2172 = vmatprep.mubr.f32.mxu0 %v3987_v56  ;;  %v1905_v0 = vmul.f32 %v3854_v62, %v4567_v25  ;;  %v2500_v62 = vld [vmem:[%s4113_s19 + $0x50] sm:$0xff] }
 0x669   : > { %3697 = vmatpush1.bf16.msra.mxu1 %v3696_v55  ;;  %v1919_v63 = vmul.f32 %v4622_v32, %v1904_v61  ;;  %v2515_v55 = vld [vmem:[%s4113_s19 + $0xc8] sm:$0xff] }
 0x66a   : > { %3699 = vmatprep.subr.bf16.mxu1 %v3698_v29  ;;  %v3856_v1 = vpop.eup %3855  ;;  %v1920_v3 = vmul.f32 %v4622_v32, %v1905_v0  ;;  %v3718_v29 = vpack.c.bf16 %v2515_v55, %v2514_v37  ;;  %v2531_v0 = vld [vmem:[%s4113_s19 + $0x148] sm:$0xff] }
 0x66b   : > { %2988 = vmatmul.mubr.msk.f32.gmra.mrb[36].mxu1 %vm645_vm1, %v1917_v33  ;;  %2996 = vmatmul.mubr.msk.f32.gmra.mrb[44].mxu0 %vm645_vm1, %v1917_v33  ;;  %v1906_v4 = vmul.f32 %v3856_v1, %v4580_v45  ;;  %v3858_v5 = vpop.eup %3857 }
 0x66c   : > { %2065 = vmatprep.mubr.f32.mxu1 %v3987_v56  ;;  %2178 = vmatprep.mubr.f32.mxu0 %v3987_v56  ;;  %v1907_v7 = vmul.f32 %v3858_v5, %v4577_v47  ;;  %v2519_v5 = vld [vmem:[%s4113_s19 + $0xe8] sm:$0xff] }
 0x66d   : > { %3701 = vmatpush1.bf16.msra.mxu1 %v3700_v59  ;;  %v1921_v6 = vmul.f32 %v4622_v32, %v1906_v4  ;;  %v2516_v59 = vld [vmem:[%s4113_s19 + $0xd0] sm:$0xff]  ;;  %v2518_v4 = vld [vmem:[%s4113_s19 + $0xe0] sm:$0xff] }
 0x66e   : > { %v1922_v43 = vmul.f32 %v4622_v32, %v1907_v7  ;;  %v3734_v32 = vpack.c.bf16 %v2523_v28, %v2522_v18  ;;  %v3722_v61 = vpack.c.bf16 %v2517_v60, %v2516_v59  ;;  %v3726_v7 = vpack.c.bf16 %v2519_v5, %v2518_v4  ;;  %v2504_v18 = vld [vmem:[%s4113_s19 + $0x70] sm:$0xff] }
 0x66f   : > { %2989 = vmatmul.mubr.msk.f32.gmra.mrb[38].mxu1 %vm645_vm1, %v1918_v24  ;;  %2997 = vmatmul.mubr.msk.f32.gmra.mrb[46].mxu0 %vm645_vm1, %v1918_v24 }
 0x670   : > { %2071 = vmatprep.mubr.f32.mxu1 %v3987_v56  ;;  %2184 = vmatprep.mubr.f32.mxu0 %v3987_v56 }
 0x671   : > { %3735 = vmatprep.subr.bf16.mxu1 %v3734_v32 }
 0x673   : > { %2990 = vmatmul.mubr.msk.f32.gmra.mrb[40].mxu1 %vm645_vm1, %v1919_v63  ;;  %2998 = vmatmul.mubr.msk.f32.gmra.mrb[48].mxu0 %vm645_vm1, %v1919_v63 }
 0x674   : > { %2077 = vmatprep.mubr.f32.mxu1 %v3987_v56  ;;  %2190 = vmatprep.mubr.f32.mxu0 %v3987_v56 }
 0x677   : > { %2991 = vmatmul.mubr.msk.f32.gmra.mrb[42].mxu1 %vm645_vm1, %v1920_v3  ;;  %2999 = vmatmul.mubr.msk.f32.gmra.mrb[50].mxu0 %vm645_vm1, %v1920_v3 }
 0x678   : > { %2083 = vmatprep.mubr.f32.mxu1 %v3987_v56  ;;  %2196 = vmatprep.mubr.f32.mxu0 %v3987_v56 }
 0x67b   : > { %2992 = vmatmul.mubr.msk.f32.gmra.mrb[44].mxu1 %vm645_vm1, %v1921_v6  ;;  %3000 = vmatmul.mubr.msk.f32.gmra.mrb[52].mxu0 %vm645_vm1, %v1921_v6 }
 0x67c   : > { %2089 = vmatprep.mubr.f32.mxu1 %v3987_v56  ;;  %2202 = vmatprep.mubr.f32.mxu0 %v3987_v56 }
 0x67f   : > { %2993 = vmatmul.mubr.msk.f32.gmra.mrb[46].mxu1 %vm645_vm1, %v1922_v43  ;;  %3001 = vmatmul.mubr.msk.f32.gmra.mrb[54].mxu0 %vm645_vm1, %v1922_v43 }
 0x680   : > { %2273 = vmatprep.mubr.f32.mxu1 %v3987_v56 }
 0x683   : > { %3002 = vmatmul.mubr.msk.f32.vlgmr.msra.gmra.mrb[48].mxu1 %vm645_vm1, %v4628_v44  ;;  %v2525_v44 = vld [vmem:[%s4113_s19 + $0x118] sm:$0xff] }
 0x684   : > { %2279 = vmatprep.mubr.f32.mxu1 %v3987_v56  ;;  %3737 = vmatpush3.bf16.msra.mxu1 %v3734_v32  ;;  %v3738_v21 = vpack.c.bf16 %v2525_v44, %v2524_v39  ;;  %v2537_v32 = vld [vmem:[%s4113_s19 + $0x178] sm:$0xff] }
 0x686   : > { %3739 = vmatprep.subr.bf16.mxu1 %v3738_v21 }
 0x687   : > { %3003 = vmatmul.mubr.msk.f32.gmra.mrb[50].mxu1 %vm645_vm1, %v1916_v53  ;;  %v3742_v53 = vpack.c.bf16 %v2527_v14, %v2526_v51 }
 0x688   : > { %2285 = vmatprep.mubr.f32.mxu1 %v3987_v56  ;;  %3741 = vmatpush3.bf16.msra.mxu1 %v3738_v21 }
 0x689   : > { %3743 = vmatprep.subr.bf16.mxu1 %v3742_v53 }
 0x68b   : > { %3004 = vmatmul.mubr.msk.f32.gmra.mrb[52].mxu1 %vm645_vm1, %v1917_v33  ;;  %v3720_v33 = vpack.c.bf16 %v2499_v9, %v2498_v8 }
 0x68c   : > { %2291 = vmatprep.mubr.f32.mxu1 %v3987_v56  ;;  %3745 = vmatpush3.bf16.msra.mxu1 %v3742_v53 }
 0x68d   : > { %3747 = vmatprep.subr.bf16.mxu1 %v3746_v17 }
 0x68f   : > { %3005 = vmatmul.mubr.msk.f32.gmra.mrb[54].mxu1 %vm645_vm1, %v1918_v24  ;;  %v2530_v24 = vld [vmem:[%s4113_s19 + $0x140] sm:$0xff] }
 0x690   : > { %2297 = vmatprep.mubr.f32.mxu1 %v3987_v56  ;;  %3749 = vmatpush3.bf16.msra.mxu1 %v3746_v17 }
 0x693   : > { %3006 = vmatmul.mubr.msk.f32.gmra.mrb[56].mxu1 %vm645_vm1, %v1919_v63  ;;  %v2501_v63 = vld [vmem:[%s4113_s19 + $0x58] sm:$0xff] }
 0x694   : > { %2303 = vmatprep.mubr.f32.mxu1 %v3987_v56  ;;  %v3724_v1 = vpack.c.bf16 %v2501_v63, %v2500_v62 }
 0x697   : > { %3007 = vmatmul.mubr.msk.f32.gmra.mrb[58].mxu1 %vm645_vm1, %v1920_v3  ;;  %v3750_v3 = vpack.c.bf16 %v2531_v0, %v2530_v24 }
 0x698   : > { %2309 = vmatprep.mubr.f32.mxu1 %v3987_v56 }
 0x699   : > { %3751 = vmatprep.subr.bf16.mxu1 %v3750_v3 }
 0x69a   : > { %3753 = vmatpush3.bf16.msra.mxu1 %v3750_v3 }
 0x69b   : > { %3008 = vmatmul.mubr.msk.f32.gmra.mrb[60].mxu1 %vm645_vm1, %v1921_v6  ;;  %v2532_v6 = vld [vmem:[%s4113_s19 + $0x150] sm:$0xff] }
 0x69c   : > { %2315 = vmatprep.mubr.f32.mxu1 %v3987_v56  ;;  %v3706_v56 = vpack.c.bf16 %v2509_v22, %v2508_v12  ;;  %v3754_v15 = vpack.c.bf16 %v2533_v11, %v2532_v6  ;;  %v2534_v12 = vld [vmem:[%s4113_s19 + $0x160] sm:$0xff]  ;;  %v3730_v22 = vpack.c.bf16 %v2521_v20, %v2520_v19 }
 0x69d   : > { %v3758_v28 = vpack.c.bf16 %v2535_v23, %v2534_v12 }
 0x69e   : > { %3707 = vmatprep.subr.bf16.mxu0 %v3706_v56  ;;  %3755 = vmatprep.subr.bf16.mxu1 %v3754_v15  ;;  %v2505_v56 = vld [vmem:[%s4113_s19 + $0x78] sm:$0xff] }
 0x69f   : > { %3009 = vmatmul.mubr.msk.f32.gmra.mrb[62].mxu1 %vm645_vm1, %v1922_v43  ;;  %3709 = vmatpush3.bf16.msra.mxu0 %v3708_v31  ;;  %v2502_v43 = vld [vmem:[%s4113_s19 + $0x60] sm:$0xff]  ;;  %v3732_v26 = vpack.c.bf16 %v2505_v56, %v2504_v18  ;;  %v2536_v31 = vld [vmem:[%s4113_s19 + $0x170] sm:$0xff] }
 0x6a0   : > { %3711 = vmatprep.subr.bf16.mxu0 %v3710_v42  ;;  %v3728_v13 = vpack.c.bf16 %v2503_v48, %v2502_v43  ;;  %3757 = vmatpush3.bf16.msra.mxu1 %v3754_v15  ;;  %v3762_v35 = vpack.c.bf16 %v2537_v32, %v2536_v31 }
 0x6a1   : > { %3759 = vmatprep.subr.bf16.mxu1 %v3758_v28 }
 0x6a3   : > { %3713 = vmatpush3.bf16.msra.mxu0 %v3712_v46 }
 0x6a4   : > { %3715 = vmatprep.subr.bf16.mxu0 %v3714_v52  ;;  %3761 = vmatpush3.bf16.msra.mxu1 %v3758_v28 }
 0x6a5   : > { %3763 = vmatprep.subr.bf16.mxu1 %v3762_v35 }
 0x6a7   : > { %3717 = vmatpush3.bf16.msra.mxu0 %v3716_v34 }
 0x6a8   : > { %3719 = vmatprep.subr.bf16.mxu0 %v3718_v29  ;;  %3765 = vmatpush3.bf16.msra.mxu1 %v3762_v35 }
 0x6ab   : > { %3721 = vmatpush3.bf16.msra.mxu0 %v3720_v33 }
 0x6ac   : > { %3723 = vmatprep.subr.bf16.mxu0 %v3722_v61 }
 0x6af   : > { %3725 = vmatpush3.bf16.msra.mxu0 %v3724_v1 }
 0x6b0   : > { %3727 = vmatprep.subr.bf16.mxu0 %v3726_v7 }
 0x6b3   : > { %3729 = vmatpush3.bf16.msra.mxu0 %v3728_v13 }
 0x6b4   : > { %3731 = vmatprep.subr.bf16.mxu0 %v3730_v22 }
 0x6b7   : > { %3733 = vmatpush3.bf16.msra.mxu0 %v3732_v26 }
 0x736   : > { %v2049_v38 = vpop.f32.mrb[32].mxu1  ;;  %v4747_v39 = vpop.f32.mrb[40].mxu0 }
 0x737   : > { %v2346_v42 = vsub.f32 0.0, %v2049_v38  ;;  %v2348_v10 = vsub.f32 0.0, %v4747_v39  ;;  %v4750_v50 = vpop.f32.mrb[33].mxu1  ;;  %v2164_v44 = vpop.f32.mrb[41].mxu0 }
 0x738   : > { %v2347_v46 = vsub.f32 0.0, %v4750_v50  ;;  %v4753_v21 = vmul.f32 %v2164_v44, %v2049_v38 }
 0x739   : > { %v2370_v49 = vmul.f32 1.442695, %v2346_v42  ;;  %v2374_v27 = vmul.f32 1.442695, %v2348_v10 }
 0x73a   : > { %v2372_v51 = vmul.f32 1.442695, %v2347_v46  ;;  %v2055_v52 = vpop.f32.mrb[34].mxu1  ;;  %v4755_v16 = vpop.f32.mrb[42].mxu0 }
 0x73b   : > { %3859 = vpow2.f32 %v2370_v49  ;;  %v2349_v30 = vsub.f32 0.0, %v2055_v52  ;;  %v2351_v14 = vsub.f32 0.0, %v4755_v16  ;;  %v4758_v34 = vpop.f32.mrb[35].mxu1  ;;  %v2170_v53 = vpop.f32.mrb[43].mxu0 }
 0x73c   : > { %3861 = vpow2.f32 %v2374_v27  ;;  %v2350_v37 = vsub.f32 0.0, %v4758_v34  ;;  %v4761_v55 = vmul.f32 %v2170_v53, %v2055_v52 }
 0x73d   : > { %3863 = vpow2.f32 %v2372_v51  ;;  %v2376_v36 = vmul.f32 1.442695, %v2349_v30  ;;  %v2380_v29 = vmul.f32 1.442695, %v2351_v14 }
 0x73e   : > { %v2378_v8 = vmul.f32 1.442695, %v2350_v37  ;;  %v2061_v9 = vpop.f32.mrb[36].mxu1  ;;  %v4763_v57 = vpop.f32.mrb[44].mxu0 }
 0x73f   : > { %3865 = vpow2.f32 %v2376_v36  ;;  %v2352_v33 = vsub.f32 0.0, %v2061_v9  ;;  %v2354_v17 = vsub.f32 0.0, %v4763_v57  ;;  %v4766_v59 = vpop.f32.mrb[37].mxu1  ;;  %v2176_v60 = vpop.f32.mrb[45].mxu0 }
 0x740   : > { %3867 = vpow2.f32 %v2380_v29  ;;  %v2353_v24 = vsub.f32 0.0, %v4766_v59  ;;  %v4769_v61 = vmul.f32 %v2176_v60, %v2061_v9 }
 0x741   : > { %3869 = vpow2.f32 %v2378_v8  ;;  %v2382_v62 = vmul.f32 1.442695, %v2352_v33  ;;  %v2386_v63 = vmul.f32 1.442695, %v2354_v17 }
 0x742   : > { %v2384_v0 = vmul.f32 1.442695, %v2353_v24  ;;  %v2067_v1 = vpop.f32.mrb[38].mxu1  ;;  %v4771_v3 = vpop.f32.mrb[46].mxu0 }
 0x743   : > { %3871 = vpow2.f32 %v2382_v62  ;;  %v2355_v4 = vsub.f32 0.0, %v2067_v1  ;;  %v2357_v5 = vsub.f32 0.0, %v4771_v3  ;;  %v4774_v6 = vpop.f32.mrb[39].mxu1  ;;  %v2182_v7 = vpop.f32.mrb[47].mxu0 }
 0x744   : > { %3873 = vpow2.f32 %v2386_v63  ;;  %v4776_v43 = vmul.f32 %v2182_v7, %v2067_v1  ;;  %v2356_v56 = vsub.f32 0.0, %v4774_v6 }
 0x745   : > { %v3860_v48 = vpop.eup %3859  ;;  %3875 = vpow2.f32 %v2384_v0  ;;  %v2388_v11 = vmul.f32 1.442695, %v2355_v4  ;;  %v2392_v18 = vmul.f32 1.442695, %v2357_v5 }
 0x746   : > { %v3862_v13 = vpop.eup %3861  ;;  %v2418_v15 = vadd.f32 1.0, %v3860_v48  ;;  %v2073_v19 = vpop.f32.mrb[40].mxu1  ;;  %v2390_v49 = vmul.f32 1.442695, %v2356_v56 }
 0x747   : > { %v4778_v20 = vpop.f32.mrb[48].mxu0  ;;  %v3864_v12 = vpop.eup %3863  ;;  %v2420_v22 = vadd.f32 1.0, %v3862_v13  ;;  %3877 = vpow2.f32 %v2388_v11  ;;  %v2358_v27 = vsub.f32 0.0, %v2073_v19 }
 0x748   : > { %v4781_v23 = vpop.f32.mrb[41].mxu1  ;;  %v2188_v26 = vpop.f32.mrb[49].mxu0  ;;  %3879 = vrcp.f32 %v2418_v15  ;;  %v2419_v28 = vadd.f32 1.0, %v3864_v12  ;;  %v2360_v37 = vsub.f32 0.0, %v4778_v20 }
 0x749   : > { %v4783_v31 = vmul.f32 %v2188_v26, %v2073_v19  ;;  %v3866_v32 = vpop.eup %3865  ;;  %3881 = vrcp.f32 %v2420_v22  ;;  %v2359_v8 = vsub.f32 0.0, %v4781_v23  ;;  %v2394_v24 = vmul.f32 1.442695, %v2358_v27 }
 0x74a   : > { %v3868_v35 = vpop.eup %3867  ;;  %3883 = vrcp.f32 %v2419_v28  ;;  %v2421_v38 = vadd.f32 1.0, %v3866_v32  ;;  %v2079_v42 = vpop.f32.mrb[42].mxu1  ;;  %v2398_v7 = vmul.f32 1.442695, %v2360_v37 }
 0x74b   : > { %v4785_v10 = vpop.f32.mrb[50].mxu0  ;;  %v3870_v44 = vpop.eup %3869  ;;  %v2423_v46 = vadd.f32 1.0, %v3868_v35  ;;  %3885 = vpow2.f32 %v2392_v18  ;;  %v2361_v62 = vsub.f32 0.0, %v2079_v42  ;;  %v2396_v19 = vmul.f32 1.442695, %v2359_v8 }
 0x74c   : > { %v4787_v51 = vpop.f32.mrb[43].mxu1  ;;  %v2194_v52 = vpop.f32.mrb[51].mxu0  ;;  %3887 = vrcp.f32 %v2421_v38  ;;  %v2422_v30 = vadd.f32 1.0, %v3870_v44  ;;  %v2363_v48 = vsub.f32 0.0, %v4785_v10 }
 0x74d   : > { %v4789_v14 = vmul.f32 %v2194_v52, %v2079_v42  ;;  %v3872_v53 = vpop.eup %3871  ;;  %3889 = vrcp.f32 %v2423_v46  ;;  %v2362_v11 = vsub.f32 0.0, %v4787_v51  ;;  %v2400_v28 = vmul.f32 1.442695, %v2361_v62 }
 0x74e   : > { %v3874_v36 = vpop.eup %3873  ;;  %3891 = vrcp.f32 %v2422_v30  ;;  %v2424_v29 = vadd.f32 1.0, %v3872_v53  ;;  %v2085_v9 = vpop.f32.mrb[44].mxu1  ;;  %v2404_v46 = vmul.f32 1.442695, %v2363_v48 }
 0x74f   : > { %v4793_v33 = vpop.f32.mrb[52].mxu0  ;;  %v3876_v17 = vpop.eup %3875  ;;  %v2426_v60 = vadd.f32 1.0, %v3874_v36  ;;  %3893 = vpow2.f32 %v2390_v49  ;;  %v2364_v12 = vsub.f32 0.0, %v2085_v9  ;;  %v2402_v49 = vmul.f32 1.442695, %v2362_v11 }
 0x750   : > { %v4795_v63 = vpop.f32.mrb[45].mxu1  ;;  %v2200_v0 = vpop.f32.mrb[53].mxu0  ;;  %3895 = vrcp.f32 %v2424_v29  ;;  %v2425_v1 = vadd.f32 1.0, %v3876_v17  ;;  %v2366_v27 = vsub.f32 0.0, %v4793_v33 }
 0x751   : > { %v4797_v4 = vmul.f32 %v2200_v0, %v2085_v9  ;;  %v3878_v5 = vpop.eup %3877  ;;  %3897 = vrcp.f32 %v2426_v60  ;;  %v2406_v53 = vmul.f32 1.442695, %v2364_v12 }
 0x752   : > { %v3880_v13 = vpop.eup %3879  ;;  %3899 = vrcp.f32 %v2425_v1  ;;  %v2427_v15 = vadd.f32 1.0, %v3878_v5  ;;  %v2091_v22 = vpop.f32.mrb[46].mxu1  ;;  %v2410_v0 = vmul.f32 1.442695, %v2366_v27 }
 0x753   : > { %v4801_v18 = vpop.f32.mrb[54].mxu0  ;;  %v3882_v56 = vpop.eup %3881  ;;  %v2443_v26 = vmul.f32 %v3880_v13, %v4753_v21  ;;  %3901 = vpow2.f32 %v2394_v24  ;;  %v2365_v21 = vsub.f32 0.0, %v4795_v63  ;;  %v2367_v8 = vsub.f32 0.0, %v2091_v22 }
 0x754   : > { %v4804_v32 = vpop.f32.mrb[47].mxu1  ;;  %v2206_v35 = vpop.f32.mrb[55].mxu0  ;;  %3903 = vrcp.f32 %v2427_v15  ;;  %v2369_v1 = vsub.f32 0.0, %v4801_v18 }
 0x755   : > { %v3884_v38 = vpop.eup %3883  ;;  %v4806_v42 = vmul.f32 %v2206_v35, %v2091_v22  ;;  %3905 = vpow2.f32 %v2398_v7  ;;  %v2408_v11 = vmul.f32 1.442695, %v2365_v21 }
 0x756   : > { %v3886_v44 = vpop.eup %3885  ;;  %3907 = vpow2.f32 %v2396_v19  ;;  %v2275_v37 = vpop.f32.mrb[48].mxu1  ;;  %v2412_v19 = vmul.f32 1.442695, %v2367_v8 }
 0x757   : > { %v3888_v52 = vpop.eup %3887  ;;  %v2429_v30 = vadd.f32 1.0, %v3886_v44  ;;  %3909 = vpow2.f32 %v2400_v28  ;;  %v2323_v9 = vmul.f32 %v2275_v37, %v4750_v50  ;;  %v2277_v17 = vpop.f32.mrb[49].mxu1 }
 0x758   : > { %v3890_v36 = vpop.eup %3889  ;;  %v2449_v29 = vmul.f32 %v3888_v52, %v4761_v55  ;;  %v2324_v24 = vmul.f32 %v2277_v17, %v4747_v39 }
 0x759   : > { %v3892_v60 = vpop.eup %3891  ;;  %3911 = vrcp.f32 %v2429_v30  ;;  %v2445_v5 = vmul.f32 %v3884_v38, %v2323_v9  ;;  %v2416_v38 = vmul.f32 1.442695, %v2369_v1 }
 0x75a   : > { %v3894_v62 = vpop.eup %3893  ;;  %3913 = vpow2.f32 %v2404_v46  ;;  %v2447_v55 = vmul.f32 %v3882_v56, %v2324_v24  ;;  %v2281_v13 = vpop.f32.mrb[50].mxu1  ;;  %v2368_v56 = vsub.f32 0.0, %v4804_v32 }
 0x75b   : > { %v3896_v7 = vpop.eup %3895  ;;  %v2428_v48 = vadd.f32 1.0, %v3894_v62  ;;  %3915 = vpow2.f32 %v2402_v49  ;;  %v2326_v12 = vmul.f32 %v2281_v13, %v4758_v34  ;;  %v2283_v39 = vpop.f32.mrb[51].mxu1  ;;  %2602 = vmatprep.mubr.f32.mxu0 %v2445_v5 }
 0x75c   : > { %v3898_v15 = vpop.eup %3897  ;;  %v2455_v50 = vmul.f32 %v3896_v7, %v4769_v61  ;;  %3917 = vpow2.f32 %v2406_v53  ;;  %v2327_v28 = vmul.f32 %v2283_v39, %v4755_v16  ;;  %2603 = vmatmul.mubr.f32.vlgmr.msra.gmra.mrb[56].mxu0 %v2443_v26  ;;  %3490 = vmatprep.mubr.f32.mxu1 %v2447_v55 }
 0x75d   : > { %v3900_v22 = vpop.eup %3899  ;;  %3919 = vrcp.f32 %v2428_v48  ;;  %v2451_v44 = vmul.f32 %v3892_v60, %v2326_v12 }
 0x75e   : > { %v3902_v35 = vpop.eup %3901  ;;  %3921 = vpow2.f32 %v2410_v0  ;;  %v2453_v49 = vmul.f32 %v3890_v36, %v2327_v28  ;;  %v2287_v27 = vpop.f32.mrb[52].mxu1  ;;  %v2414_v36 = vmul.f32 1.442695, %v2368_v56 }
 0x75f   : > { %v3904_v46 = vpop.eup %3903  ;;  %v2430_v61 = vadd.f32 1.0, %v3902_v35  ;;  %3923 = vpow2.f32 %v2408_v11  ;;  %v2329_v30 = vmul.f32 %v2287_v27, %v4766_v59  ;;  %v2289_v16 = vpop.f32.mrb[53].mxu1  ;;  %2607 = vmatprep.mubr.f32.mxu0 %v2451_v44 }
 0x760   : > { %v3906_v34 = vpop.eup %3905  ;;  %v2461_v52 = vmul.f32 %v3904_v46, %v4776_v43  ;;  %3925 = vpow2.f32 %v2412_v19  ;;  %v2330_v21 = vmul.f32 %v2289_v16, %v4763_v57  ;;  %2608 = vmatmul.mubr.f32.gmra.mrb[58].mxu0 %v2449_v29  ;;  %3491 = vmatmul.mubr.f32.vlgmr.msra.gmra.mrb[64].mxu1 %v2453_v49 }
 0x761   : > { %v3908_v26 = vpop.eup %3907  ;;  %3927 = vrcp.f32 %v2430_v61  ;;  %v2432_v53 = vadd.f32 1.0, %v3906_v34  ;;  %v2457_v9 = vmul.f32 %v3900_v22, %v2329_v30 }
 0x762   : > { %v3910_v37 = vpop.eup %3909  ;;  %v2431_v8 = vadd.f32 1.0, %v3908_v26  ;;  %3929 = vpow2.f32 %v2416_v38  ;;  %v2459_v60 = vmul.f32 %v3898_v15, %v2330_v21  ;;  %v2293_v24 = vpop.f32.mrb[54].mxu1 }
 0x763   : > { %v3912_v17 = vpop.eup %3911  ;;  %3931 = vrcp.f32 %v2432_v53  ;;  %v2433_v43 = vadd.f32 1.0, %v3910_v37  ;;  %v2332_v62 = vmul.f32 %v2293_v24, %v4774_v6  ;;  %v2295_v0 = vpop.f32.mrb[55].mxu1  ;;  %2612 = vmatprep.mubr.f32.mxu0 %v2457_v9 }
 0x764   : > { %v3914_v59 = vpop.eup %3913  ;;  %3933 = vrcp.f32 %v2431_v8  ;;  %v2333_v29 = vmul.f32 %v2295_v0, %v4771_v3  ;;  %2613 = vmatmul.mubr.f32.gmra.mrb[60].mxu0 %v2455_v50  ;;  %3493 = vmatprep.mubr.f32.mxu1 %v2459_v60 }
 0x765   : > { %v3916_v1 = vpop.eup %3915  ;;  %3935 = vrcp.f32 %v2433_v43  ;;  %v2435_v57 = vadd.f32 1.0, %v3914_v59 }
 0x766   : > { %v3918_v5 = vpop.eup %3917  ;;  %v2434_v7 = vadd.f32 1.0, %v3916_v1  ;;  %3937 = vpow2.f32 %v2414_v36  ;;  %v2465_v55 = vmul.f32 %v3912_v17, %v2333_v29  ;;  %v2299_v13 = vpop.f32.mrb[56].mxu1 }
 0x767   : > { %v3920_v48 = vpop.eup %3919  ;;  %3939 = vrcp.f32 %v2435_v57  ;;  %v2436_v11 = vadd.f32 1.0, %v3918_v5  ;;  %v2335_v19 = vmul.f32 %v2299_v13, %v4781_v23  ;;  %v2301_v12 = vpop.f32.mrb[57].mxu1 }
 0x768   : > { %v3922_v15 = vpop.eup %3921  ;;  %3941 = vrcp.f32 %v2434_v7  ;;  %v2463_v6 = vmul.f32 %v3920_v48, %v2332_v62  ;;  %v2336_v3 = vmul.f32 %v2301_v12, %v4778_v20  ;;  %3494 = vmatmul.mubr.f32.gmra.mrb[66].mxu1 %v2465_v55 }
 0x769   : > { %v3924_v39 = vpop.eup %3923  ;;  %3943 = vrcp.f32 %v2436_v11  ;;  %v2438_v22 = vadd.f32 1.0, %v3922_v15 }
 0x76a   : > { %v3926_v50 = vpop.eup %3925  ;;  %v2437_v28 = vadd.f32 1.0, %v3924_v39  ;;  %2617 = vmatprep.mubr.f32.mxu0 %v2463_v6  ;;  %v2305_v56 = vpop.f32.mrb[58].mxu1 }
 0x76b   : > { %v3928_v35 = vpop.eup %3927  ;;  %3945 = vrcp.f32 %v2438_v22  ;;  %v2439_v38 = vadd.f32 1.0, %v3926_v50  ;;  %2618 = vmatmul.mubr.f32.gmra.mrb[62].mxu0 %v2461_v52  ;;  %v2338_v23 = vmul.f32 %v2305_v56, %v4787_v51  ;;  %v2307_v61 = vpop.f32.mrb[59].mxu1 }
 0x76c   : > { %v3930_v44 = vpop.eup %3929  ;;  %v2467_v46 = vmul.f32 %v3928_v35, %v4783_v31  ;;  %3947 = vrcp.f32 %v2437_v28  ;;  %v2339_v20 = vmul.f32 %v2307_v61, %v4785_v10 }
 0x76d   : > { %v3932_v49 = vpop.eup %3931  ;;  %3949 = vrcp.f32 %v2439_v38  ;;  %v2441_v27 = vadd.f32 1.0, %v3930_v44 }
 0x76e   : > { %v3934_v34 = vpop.eup %3933  ;;  %v2471_v30 = vmul.f32 %v3932_v49, %v2336_v3  ;;  %v2311_v53 = vpop.f32.mrb[60].mxu1 }
 0x76f   : > { %v3936_v16 = vpop.eup %3935  ;;  %3951 = vrcp.f32 %v2441_v27  ;;  %v2469_v26 = vmul.f32 %v3934_v34, %v2335_v19  ;;  %v2341_v31 = vmul.f32 %v2311_v53, %v4795_v63  ;;  %v2313_v37 = vpop.f32.mrb[61].mxu1 }
 0x770   : > { %v3938_v52 = vpop.eup %3937  ;;  %v2473_v21 = vmul.f32 %v3936_v16, %v4789_v14  ;;  %3496 = vmatprep.mubr.f32.mxu1 %v2471_v30  ;;  %v2342_v36 = vmul.f32 %v2313_v37, %v4793_v33 }
 0x771   : > { %v3940_v51 = vpop.eup %3939  ;;  %v2440_v8 = vadd.f32 1.0, %v3938_v52  ;;  %2622 = vmatprep.mubr.f32.mxu0 %v2469_v26 }
 0x772   : > { %v3942_v9 = vpop.eup %3941  ;;  %v2477_v10 = vmul.f32 %v3940_v51, %v2339_v20  ;;  %2623 = vmatmul.mubr.f32.gmra.mrb[64].mxu0 %v2467_v46  ;;  %v2317_v60 = vpop.f32.mrb[62].mxu1 }
 0x773   : > { %v3944_v17 = vpop.eup %3943  ;;  %3953 = vrcp.f32 %v2440_v8  ;;  %v2475_v43 = vmul.f32 %v3942_v9, %v2338_v23  ;;  %v2344_v14 = vmul.f32 %v2317_v60, %v4804_v32  ;;  %v2319_v59 = vpop.f32.mrb[63].mxu1 }
 0x774   : > { %v2479_v24 = vmul.f32 %v3944_v17, %v4797_v4  ;;  %3497 = vmatmul.mubr.f32.gmra.mrb[68].mxu1 %v2477_v10  ;;  %v2345_v62 = vmul.f32 %v2319_v59, %v4801_v18 }
 0x775   : > { %v3946_v63 = vpop.eup %3945  ;;  %2627 = vmatprep.mubr.f32.mxu0 %v2475_v43 }
 0x776   : > { %v3948_v0 = vpop.eup %3947  ;;  %v2483_v1 = vmul.f32 %v3946_v63, %v2342_v36  ;;  %2628 = vmatmul.mubr.f32.gmra.mrb[66].mxu0 %v2473_v21 }
 0x777   : > { %v3950_v33 = vpop.eup %3949  ;;  %v2481_v57 = vmul.f32 %v3948_v0, %v2341_v31 }
 0x778   : > { %v2485_v29 = vmul.f32 %v3950_v33, %v4806_v42  ;;  %3499 = vmatprep.mubr.f32.mxu1 %v2483_v1 }
 0x779   : > { %v3952_v5 = vpop.eup %3951  ;;  %2632 = vmatprep.mubr.f32.mxu0 %v2481_v57 }
 0x77a   : > { %v2489_v7 = vmul.f32 %v3952_v5, %v2345_v62  ;;  %2633 = vmatmul.mubr.f32.gmra.mrb[68].mxu0 %v2479_v24 }
 0x77c   : > { %3500 = vmatmul.mubr.f32.gmra.mrb[70].mxu1 %v2489_v7 }
 0x77d   : > { %v3954_v4 = vpop.eup %3953 }
 0x77e   : > { %v2487_v32 = vmul.f32 %v3954_v4, %v2344_v14 }
 0x780   : > { %2637 = vmatprep.mubr.f32.mxu0 %v2487_v32 }
 0x781   : > { %2638 = vmatmul.mubr.f32.gmra.mrb[70].mxu0 %v2485_v29 }
 0x82f   : > { %v3178_v48 = vpop.f32.mrb[56].mxu0 }
 0x830   : > { %v3179_v11 = vpop.f32.mrb[57].mxu0 }
 0x831   : > { %v3180_v18 = vadd.f32 %v3179_v11, %v3178_v48 }
 0x833   : > { %v3181_v55 = vpop.f32.mrb[58].mxu0  ;;  %v3492_v13 = vpop.f32.mrb[64].mxu1 }
 0x834   : > { %v3182_v15 = vpop.f32.mrb[59].mxu0  ;;  %v2709_v6 = vpop.f32.mrb[65].mxu1 }
 0x835   : > { %v3183_v19 = vadd.f32 %v3182_v15, %v3181_v55  ;;  %v2710_v12 = vadd.f32 %v3180_v18, %v2709_v6 }
 0x837   : > { %v2715_v42 = vadd.f32 %v3492_v13, %v3183_v19  ;;  %v2748_v39 = vadd.f32 %v2710_v12, %v4551_v41  ;;  %v3184_v22 = vpop.f32.mrb[60].mxu0 }
 0x838   : > { %v3185_v3 = vpop.f32.mrb[61].mxu0 }
 0x839   : > { %v2749_v50 = vadd.f32 %v2715_v42, %v4549_v54  ;;  %2756 = vst.msk [vmem:[#allocation2] sm:$0xff] %vm645_vm1, %v2748_v39  ;;  %v3186_v28 = vadd.f32 %v3185_v3, %v3184_v22  ;;  %2768 = vst.msk [vmem:[%s4920_s20] sm:$0xff] (!%p3010_p6), %vm645_vm1, %v2748_v39 }
 0x83b   : > { %2757 = vst.msk [vmem:[#allocation2 + $0x8] sm:$0xff] %vm645_vm1, %v2749_v50  ;;  %v3495_v35 = vpop.f32.mrb[66].mxu1  ;;  %2769 = vst.msk [vmem:[%s4920_s20 + $0x8] sm:$0xff] (!%p3010_p6), %vm645_vm1, %v2749_v50 }
 0x83c   : > { %v2719_v38 = vpop.f32.mrb[67].mxu1 }
 0x83d   : > { %v2720_v44 = vadd.f32 %v3186_v28, %v2719_v38 }
 0x83e   : > { %v3187_v56 = vpop.f32.mrb[62].mxu0 }
 0x83f   : > { %v3188_v46 = vpop.f32.mrb[63].mxu0  ;;  %v2750_v61 = vadd.f32 %v2720_v44, %v4560_v58 }
 0x840   : > { %v3189_v23 = vadd.f32 %v3188_v46, %v3187_v56 }
 0x841   : > { %2758 = vst.msk [vmem:[#allocation2 + $0x10] sm:$0xff] %vm645_vm1, %v2750_v61  ;;  %2770 = vst.msk [vmem:[%s4920_s20 + $0x10] sm:$0xff] (!%p3010_p6), %vm645_vm1, %v2750_v61 }
 0x842   : > { %v2725_v49 = vadd.f32 %v3495_v35, %v3189_v23 }
 0x844   : > { %v2751_v41 = vadd.f32 %v2725_v49, %v4557_v40 }
 0x845   : > { %v3190_v27 = vpop.f32.mrb[64].mxu0 }
 0x846   : > { %2759 = vst.msk [vmem:[#allocation2 + $0x18] sm:$0xff] %vm645_vm1, %v2751_v41  ;;  %v3191_v54 = vpop.f32.mrb[65].mxu0  ;;  %2771 = vst.msk [vmem:[%s4920_s20 + $0x18] sm:$0xff] (!%p3010_p6), %vm645_vm1, %v2751_v41 }
 0x847   : > { %v3192_v20 = vadd.f32 %v3191_v54, %v3190_v27  ;;  %v3498_v34 = vpop.f32.mrb[68].mxu1 }
 0x848   : > { %v2729_v30 = vpop.f32.mrb[69].mxu1 }
 0x849   : > { %v3193_v16 = vpop.f32.mrb[66].mxu0  ;;  %v2730_v26 = vadd.f32 %v3192_v20, %v2729_v30 }
 0x84a   : > { %v3194_v53 = vpop.f32.mrb[67].mxu0 }
 0x84b   : > { %v3195_v52 = vadd.f32 %v3194_v53, %v3193_v16  ;;  %v2752_v21 = vadd.f32 %v2730_v26, %v4570_v2 }
 0x84d   : > { %v2735_v31 = vadd.f32 %v3498_v34, %v3195_v52  ;;  %2760 = vst.msk [vmem:[#allocation2 + $0x20] sm:$0xff] %vm645_vm1, %v2752_v21  ;;  %v3196_v58 = vpop.f32.mrb[68].mxu0  ;;  %2772 = vst.msk [vmem:[%s4920_s20 + $0x20] sm:$0xff] (!%p3010_p6), %vm645_vm1, %v2752_v21 }
 0x84e   : > { %v3197_v37 = vpop.f32.mrb[69].mxu0 }
 0x84f   : > { %v2753_v40 = vadd.f32 %v2735_v31, %v4567_v25  ;;  %v3198_v51 = vadd.f32 %v3197_v37, %v3196_v58  ;;  %v3501_v8 = vpop.f32.mrb[70].mxu1 }
 0x850   : > { %v2739_v36 = vpop.f32.mrb[71].mxu1 }
 0x851   : > { %2761 = vst.msk [vmem:[#allocation2 + $0x28] sm:$0xff] %vm645_vm1, %v2753_v40  ;;  %v2740_v9 = vadd.f32 %v3198_v51, %v2739_v36  ;;  %2773 = vst.msk [vmem:[%s4920_s20 + $0x28] sm:$0xff] (!%p3010_p6), %vm645_vm1, %v2753_v40 }
 0x853   : > { %v2754_v10 = vadd.f32 %v2740_v9, %v4580_v45 }
 0x854   : > { %v3199_v17 = vpop.f32.mrb[70].mxu0 }
 0x855   : > { %v3200_v43 = vpop.f32.mrb[71].mxu0  ;;  %2762 = vst.msk [vmem:[#allocation2 + $0x30] sm:$0xff] %vm645_vm1, %v2754_v10  ;;  %2774 = vst.msk [vmem:[%s4920_s20 + $0x30] sm:$0xff] (!%p3010_p6), %vm645_vm1, %v2754_v10 }
 0x856   : > { %v3201_v2 = vadd.f32 %v3200_v43, %v3199_v17  ;;  %2767 = sbr.rel (%p3010_p6) target bundleno = 2141 (0x85d), region = 80 }
 0x858   : > { %v2745_v60 = vadd.f32 %v3501_v8, %v3201_v2 }
 0x85a   : > { %v2755_v24 = vadd.f32 %v2745_v60, %v4577_v47 }
 0x85c   : > { %2763 = vst.msk [vmem:[#allocation2 + $0x38] sm:$0xff] %vm645_vm1, %v2755_v24  ;;  %2775 = vst.msk [vmem:[%s4920_s20 + $0x38] sm:$0xff] (!%p3010_p6), %vm645_vm1, %v2755_v24 }
 0x85d PF: > { %s4921_s23 = sld [smem:[#allocation4_spill]]  ;;  %s4922_s25 = sld [smem:[#allocation3_spill]] }
 0x85e   : > { %s4923_s26 = sld [smem:[#allocation5_spill]] }
 0x863   : > { %s23_s27 = sadd.s32 1, %s4921_s23  }
 0x864   : > { %p20_p7 = scmp.ge.s32.totalorder %s23_s27, 4  }
 0x866   :  { %22 = sbr.rel (!%p20_p7) target bundleno = 3 (0x3), region = 134 }

</bundles_post_ra>
